<compile_context>
chip_gen: v7x
topology: tpu7x:2x2x1
jax: 0.10.0
libtpu: 0.0.40
codegen_flags: <defaults>
</compile_context>

<pallas_src>
import functools
import numpy as np
import jax
import jax.numpy as jnp
from jax.experimental import pallas as pl
from jax.experimental.pallas import tpu as pltpu

_LANE = 128
_IM2COL_MAX_CIN = 128   # below this: one big-K im2col matmul; above: 9 accumulating matmuls


def _round_up(x, m):
    return (x + m - 1) // m * m


def _interp_matrix(n_in, n_out):
    """(n_out, n_in) A s.t. y = A @ x is PyTorch linear interp, align_corners=True."""
    A = np.zeros((n_out, n_in), dtype=np.float32)
    if n_in == 1 or n_out == 1:
        A[:, 0] = 1.0
        return A
    for i in range(n_out):
        src = i * (n_in - 1) / (n_out - 1)
        i0 = min(int(np.floor(src)), n_in - 1)
        i1 = min(i0 + 1, n_in - 1)
        f = src - i0
        A[i, i0] += 1.0 - f
        A[i, i1] += f
    return A


# ---------------------------------------------------------------------------
# In-kernel helpers.  Activation layout: (C, L) with L = round_up(Hp*Wp, 128),
# Hp=H+2, Wp=W+2, flat index i*Wp+j over the zero-padded grid (lane axis).
# A 3x3 tap (dy, dx) of the padded image is the same flat vector shifted by
# (dy-1)*Wp+(dx-1), so the conv only needs static lane slices of one VMEM
# buffer that carries a zero margin of M >= Wp+1 columns on each side.
# ---------------------------------------------------------------------------
def _conv3x3(pad_ref, cols_ref, w_ref, b_ref, mask, *, cin, Wp, L, M):
    """Masked SAME 3x3 conv from the zero-margined bf16 buffer; returns f32 (Cout, L)."""
    cout = w_ref.shape[0]
    if cin >= _IM2COL_MAX_CIN:
        # Large Cin: accumulate 9 matmuls straight off lane-shifted slices of the
        # padded buffer — no 9x im2col store traffic, no (9*Cin, L) scratch.
        acc = jnp.zeros((cout, L), jnp.float32)
        for dy in range(3):
            for dx in range(3):
                t = dy * 3 + dx
                s = M + (dy - 1) * Wp + (dx - 1)
                acc += jnp.dot(w_ref[:, t * cin:(t + 1) * cin], pad_ref[:, s:s + L],
                               preferred_element_type=jnp.float32)
    else:
        # Small Cin (v5e-friendly): one big-K (K = 9*Cin) im2col matmul.
        for dy in range(3):
            for dx in range(3):
                t = dy * 3 + dx
                s = M + (dy - 1) * Wp + (dx - 1)
                cols_ref[t * cin:(t + 1) * cin, :] = pad_ref[:, s:s + L]
        acc = jnp.dot(w_ref[...], cols_ref[0:9 * cin, :],
                      preferred_element_type=jnp.float32)
    return (acc + b_ref[...]) * mask


def _stage1_kernel(x1r_ref, x2p_ref, awt_ref, w1_ref, b1_ref, wd1_ref, bd1_ref,
                   mask_ref, y1_ref, s1_ref, q1_ref, pad_a, pad_b, cols,
                   *, H, Wp, HpWp, L, M, In, Out, up_taps):
    mask = mask_ref[...]                                       # (1, L) interior mask

    # ---- conv1(x2): In -> Out ------------------------------------------------
    # Every byte of pad_a is written this step: zero the margins + lane tail,
    # then the pre-padded x2 interior (no cross-step scratch state).
    pad_a[:, 0:M] = jnp.zeros((In, M), pad_a.dtype)
    pad_a[:, M + HpWp:2 * M + L] = jnp.zeros((In, M + L - HpWp), pad_a.dtype)
    pad_a[:, M:M + HpWp] = x2p_ref[0].astype(pad_a.dtype)
    x2c = _conv3x3(pad_a, cols, w1_ref, b1_ref, mask, cin=In, Wp=Wp, L=L, M=M)

    # ---- channel concat [conv1(x2), up(x1)] built straight in dc1's buffer ----
    # rows [0, Out)     : conv1(x2)  (full-L masked write covers its own borders)
    # rows [Out, 2*Out) : bilinear 2x upsample of x1, one padded row per write
    pad_b[:, 0:M + Wp] = jnp.zeros((2 * Out, M + Wp), pad_b.dtype)
    pad_b[:, M + (H + 1) * Wp:2 * M + L] = \
        jnp.zeros((2 * Out, M + L - (H + 1) * Wp), pad_b.dtype)
    pad_b[0:Out, M:M + L] = x2c.astype(pad_b.dtype)

    # separable bilinear upsample (align_corners=True): width via ONE small
    # matmul (awt already carries the zero side-border), height via static
    # 2-tap blends on the VPU.
    awt = awt_ref[...]                                         # (W1, Wp) bf16
    wide = jnp.dot(x1r_ref[0].astype(jnp.bfloat16), awt,
                   preferred_element_type=jnp.float32)         # (H1*Out, Wp) f32
    for o, (i0, i1, f0, f1) in enumerate(up_taps):
        r0 = wide[i0 * Out:(i0 + 1) * Out, :]
        row = r0 if f1 == 0.0 else f0 * r0 + f1 * wide[i1 * Out:(i1 + 1) * Out, :]
        pad_b[Out:2 * Out, M + (o + 1) * Wp:M + (o + 2) * Wp] = row.astype(pad_b.dtype)

    # ---- DoubleConv.conv1: 2*Out -> In ----------------------------------------
    y1 = _conv3x3(pad_b, cols, wd1_ref, bd1_ref, mask, cin=2 * Out, Wp=Wp, L=L, M=M)
    y1_ref[0] = y1
    # per-sample BatchNorm statistics (tiny cross-batch reduce stays in XLA)
    s1_ref[0] = jnp.sum(y1, axis=1, keepdims=True)
    q1_ref[0] = jnp.sum(y1 * y1, axis=1, keepdims=True)


def _stage2_kernel(y1_ref, sc_ref, sh_ref, wd2_ref, bd2_ref, mask_ref,
                   y2_ref, s2_ref, q2_ref, pad, cols, *, Wp, L, M, In):
    mask = mask_ref[...]
    # BN1 apply + ReLU fused as the prologue of DoubleConv.conv2
    a1 = jnp.maximum(y1_ref[0] * sc_ref[...] + sh_ref[...], 0.0) * mask
    pad[:, 0:M] = jnp.zeros((In, M), pad.dtype)
    pad[:, M + L:2 * M + L] = jnp.zeros((In, M), pad.dtype)
    pad[:, M:M + L] = a1.astype(pad.dtype)
    y2 = _conv3x3(pad, cols, wd2_ref, bd2_ref, mask, cin=In, Wp=Wp, L=L, M=M)
    y2_ref[0] = y2
    s2_ref[0] = jnp.sum(y2, axis=1, keepdims=True)
    q2_ref[0] = jnp.sum(y2 * y2, axis=1, keepdims=True)


def _stage3_kernel(y2_ref, sc_ref, sh_ref, o_ref, *, H, W, Wp):
    a = jnp.maximum(y2_ref[0] * sc_ref[...] + sh_ref[...], 0.0)     # (In, L)
    # emit the cropped, lane-dense (In, H*W) output directly (no XLA slice after)
    for r in range(H):
        s = (r + 1) * Wp + 1
        o_ref[0, :, r * W:(r + 1) * W] = a[:, s:s + W]


# ---------------------------------------------------------------------------
# Up.forward
# ---------------------------------------------------------------------------
def up_forward(params, x1_nchw, x2_nchw, eps=1e-5):
    N, Out, H1, W1 = x1_nchw.shape
    N2, In, H, W = x2_nchw.shape
    assert N2 == N and H == 2 * H1 and W == 2 * W1       # exact 2x skip connection
    Hp, Wp = H + 2, W + 2
    HpWp = Hp * Wp
    L = _round_up(HpWp, _LANE)          # lane-dense flat spatial width
    M = _round_up(Wp + 1, _LANE)        # zero margin, valid for any W

    # -- constants -------------------------------------------------------------
    aw = _interp_matrix(W1, W)                            # (W, W1)
    awt_np = np.zeros((W1, Wp), np.float32)
    awt_np[:, 1:W + 1] = aw.T                             # width interp + zero side border
    awt = jnp.asarray(awt_np, jnp.bfloat16)

    ah = _interp_matrix(H1, H)                            # (H, H1): <=2 taps per row
    up_taps = []
    for o in range(H):
        nz = np.nonzero(ah[o])[0]
        i0, i1 = int(nz[0]), int(nz[-1])
        f0 = float(ah[o, i0])
        f1 = float(ah[o, i1]) if i1 != i0 else 0.0
        up_taps.append((i0, i1, f0, f1))
    up_taps = tuple(up_taps)

    m = np.zeros((1, L), np.float32)
    mm = np.zeros((Hp, Wp), np.float32)
    mm[1:H + 1, 1:W + 1] = 1.0
    m[0, :HpWp] = mm.reshape(-1)
    mask = jnp.asarray(m)

    def w_t(w):  # HWIO (3,3,Cin,Cout) -> bf16 (Cout, 9*Cin) matching the tap order
        cin, cout = w.shape[2], w.shape[3]
        wt = jnp.transpose(w.reshape(9, cin, cout), (2, 0, 1)).reshape(cout, 9 * cin)
        return wt.astype(jnp.bfloat16)

    w1t = w_t(params["conv1_w"]); b1 = params["conv1_b"].reshape(Out, 1)
    wd1t = w_t(params["dc1_w"]); bd1 = params["dc1_b"].reshape(In, 1)
    wd2t = w_t(params["dc2_w"]); bd2 = params["dc2_b"].reshape(In, 1)

    # -- layout glue (small x1 transpose so the height blend reads contiguous
    #    channel blocks; x2 pre-pad kept in the wrapper for now — see TODO) -----
    x1r = jnp.transpose(x1_nchw, (0, 2, 1, 3)).reshape(N, H1 * Out, W1)
    x2p = jnp.pad(x2_nchw, ((0, 0), (0, 0), (1, 1), (1, 1))).reshape(N, In, HpWp)

    def const(*shape):
        return pl.BlockSpec(shape, lambda n: (0,) * len(shape))

    def per_n(c, l):
        return pl.BlockSpec((1, c, l), lambda n: (n, 0, 0))

    cpar = pltpu.CompilerParams(dimension_semantics=("parallel",))
    act_shape = jax.ShapeDtypeStruct((N, In, L), jnp.float32)
    stat_shape = jax.ShapeDtypeStruct((N, In, 1), jnp.float32)

    im2col_rows1 = [9 * c for c in (In, 2 * Out) if c < _IM2COL_MAX_CIN]
    cols_rows1 = max(im2col_rows1) if im2col_rows1 else 16
    cols_rows2 = 9 * In if In < _IM2COL_MAX_CIN else 16

    y1, s1, q1 = pl.pallas_call(
        functools.partial(_stage1_kernel, H=H, Wp=Wp, HpWp=HpWp, L=L, M=M,
                          In=In, Out=Out, up_taps=up_taps),
        grid=(N,),
        in_specs=[per_n(H1 * Out, W1), per_n(In, HpWp), const(W1, Wp),
                  const(Out, 9 * In), const(Out, 1),
                  const(In, 9 * 2 * Out), const(In, 1), const(1, L)],
        out_specs=(per_n(In, L), per_n(In, 1), per_n(In, 1)),
        out_shape=(act_shape, stat_shape, stat_shape),
        scratch_shapes=[pltpu.VMEM((In, 2 * M + L), jnp.bfloat16),
                        pltpu.VMEM((2 * Out, 2 * M + L), jnp.bfloat16),
                        pltpu.VMEM((cols_rows1, L), jnp.bfloat16)],
        compiler_params=cpar,
    )(x1r, x2p, awt, w1t, b1, wd1t, bd1, mask)

    cnt = float(N * H * W)

    def bn_scale_shift(s, q):
        mean = jnp.sum(s[:, :, 0], axis=0) / cnt
        var = jnp.maximum(jnp.sum(q[:, :, 0], axis=0) / cnt - mean * mean, 0.0)
        scale = params["bn_gamma"] / jnp.sqrt(var + eps)
        shift = params["bn_beta"] - mean * scale
        return scale.reshape(In, 1), shift.reshape(In, 1)

    sc1, sh1 = bn_scale_shift(s1, q1)

    y2, s2, q2 = pl.pallas_call(
        functools.partial(_stage2_kernel, Wp=Wp, L=L, M=M, In=In),
        grid=(N,),
        in_specs=[per_n(In, L), const(In, 1), const(In, 1),
                  const(In, 9 * In), const(In, 1), const(1, L)],
        out_specs=(per_n(In, L), per_n(In, 1), per_n(In, 1)),
        out_shape=(act_shape, stat_shape, stat_shape),
        scratch_shapes=[pltpu.VMEM((In, 2 * M + L), jnp.bfloat16),
                        pltpu.VMEM((cols_rows2, L), jnp.bfloat16)],
        compiler_params=cpar,
    )(y1, sc1, sh1, wd2t, bd2, mask)

    sc2, sh2 = bn_scale_shift(s2, q2)

    out_flat = pl.pallas_call(
        functools.partial(_stage3_kernel, H=H, W=W, Wp=Wp),
        grid=(N,),
        in_specs=[per_n(In, L), const(In, 1), const(In, 1)],
        out_specs=per_n(In, H * W),
        out_shape=jax.ShapeDtypeStruct((N, In, H * W), jnp.float32),
        compiler_params=cpar,
    )(y2, sc2, sh2)

    # free reshape back to NCHW (crop already happened in-kernel)
    return out_flat.reshape(N, In, H, W)


def init_params(key, In, Out):
    ks = jax.random.split(key, 8)

    def w(k, shape, fan_in):
        return jax.random.normal(k, shape, jnp.float32) / np.sqrt(fan_in)

    return {
        "conv1_w": w(ks[0], (3, 3, In, Out), 9 * In),
        "conv1_b": 0.1 * jax.random.normal(ks[1], (Out,), jnp.float32),
        "dc1_w": w(ks[2], (3, 3, 2 * Out, In), 9 * 2 * Out),
        "dc1_b": 0.1 * jax.random.normal(ks[3], (In,), jnp.float32),
        "dc2_w": w(ks[4], (3, 3, In, In), 9 * In),
        "dc2_b": 0.1 * jax.random.normal(ks[5], (In,), jnp.float32),
        "bn_gamma": 1.0 + 0.1 * jax.random.normal(ks[6], (In,), jnp.float32),
        "bn_beta": 0.1 * jax.random.normal(ks[7], (In,), jnp.float32),
    }


# ---------------------------------------------------------------------------
# Pure-JAX reference (sanity check only)
# ---------------------------------------------------------------------------
def _conv_ref(x_nchw, w, b):
    out = jax.lax.conv_general_dilated(
        x_nchw, w, window_strides=(1, 1), padding="SAME",
        dimension_numbers=("NCHW", "HWIO", "NCHW"))
    return out + b[None, :, None, None]


def _bn_relu_ref(x, gamma, beta, eps=1e-5):
    mean = jnp.mean(x, axis=(0, 2, 3), keepdims=True)
    var = jnp.mean((x - mean) ** 2, axis=(0, 2, 3), keepdims=True)
    y = (x - mean) / jnp.sqrt(var + eps)
    y = y * gamma[None, :, None, None] + beta[None, :, None, None]
    return jnp.maximum(y, 0.0)


def up_forward_ref(params, x1, x2):
    _, _, H, W = x1.shape
    ah = jnp.asarray(_interp_matrix(H, 2 * H))
    aw = jnp.asarray(_interp_matrix(W, 2 * W))
    x1u = jnp.einsum("oh,nchw,pw->ncop", ah, x1, aw)
    x2c = _conv_ref(x2, params["conv1_w"], params["conv1_b"])
    x = jnp.concatenate([x2c, x1u], axis=1)
    x = _conv_ref(x, params["dc1_w"], params["dc1_b"])
    x = _bn_relu_ref(x, params["bn_gamma"], params["bn_beta"])
    x = _conv_ref(x, params["dc2_w"], params["dc2_b"])
    x = _bn_relu_ref(x, params["bn_gamma"], params["bn_beta"])
    return x


if __name__ == "__main__":
    In, Out = 8, 4
    N, H, W = 2, 8, 8

    key = jax.random.PRNGKey(0)
    k1, k2, kp = jax.random.split(key, 3)
    x1 = jax.random.normal(k1, (N, Out, H, W), jnp.float32)          # coarse feature map
    x2 = jax.random.normal(k2, (N, In, 2 * H, 2 * W), jnp.float32)   # skip connection
    params = init_params(kp, In, Out)

    out = jax.block_until_ready(up_forward(params, x1, x2))
    ref = jax.block_until_ready(up_forward_ref(params, x1, x2))

    assert out.shape == (N, In, 2 * H, 2 * W), out.shape
    np.testing.assert_allclose(np.asarray(out), np.asarray(ref), atol=5e-2, rtol=5e-2)
    print("KERNEL_OK")
</pallas_src>

<mosaic_0001>
module attributes {stable_mosaic.version = 11 : i64} {
  func.func @_stage1_kernel(%arg0: i32, %arg1: memref<1x32x8xf32, #tpu.memory_space<vmem>>, %arg2: memref<1x8x324xf32, #tpu.memory_space<vmem>>, %arg3: memref<8x18xbf16, #tpu.memory_space<vmem>>, %arg4: memref<4x72xbf16, #tpu.memory_space<vmem>>, %arg5: memref<4x1xf32, #tpu.memory_space<vmem>>, %arg6: memref<8x72xbf16, #tpu.memory_space<vmem>>, %arg7: memref<8x1xf32, #tpu.memory_space<vmem>>, %arg8: memref<1x384xf32, #tpu.memory_space<vmem>>, %arg9: memref<1x8x384xf32, #tpu.memory_space<vmem>>, %arg10: memref<1x8x1xf32, #tpu.memory_space<vmem>>, %arg11: memref<1x8x1xf32, #tpu.memory_space<vmem>>, %arg12: memref<8x640xbf16, #tpu.memory_space<vmem>>, %arg13: memref<8x640xbf16, #tpu.memory_space<vmem>>, %arg14: memref<72x384xbf16, #tpu.memory_space<vmem>>) attributes {dimension_semantics = [#tpu.dimension_semantics<parallel>], iteration_bounds = array<i64: 2>, scalar_prefetch = 0 : i64, scratch_operands = 3 : i64, tpu.core_type = #tpu.core_type<tc>, window_params = [{transform_indices = @transform_0, window_bounds = array<i64: 1, 32, 8>}, {transform_indices = @transform_1, window_bounds = array<i64: 1, 8, 324>}, {pipeline_mode = #tpu.pipeline_mode<synchronous>, transform_indices = @transform_2, window_bounds = array<i64: 8, 18>}, {pipeline_mode = #tpu.pipeline_mode<synchronous>, transform_indices = @transform_3, window_bounds = array<i64: 4, 72>}, {pipeline_mode = #tpu.pipeline_mode<synchronous>, transform_indices = @transform_4, window_bounds = array<i64: 4, 1>}, {pipeline_mode = #tpu.pipeline_mode<synchronous>, transform_indices = @transform_5, window_bounds = array<i64: 8, 72>}, {pipeline_mode = #tpu.pipeline_mode<synchronous>, transform_indices = @transform_6, window_bounds = array<i64: 8, 1>}, {pipeline_mode = #tpu.pipeline_mode<synchronous>, transform_indices = @transform_7, window_bounds = array<i64: 1, 384>}, {transform_indices = @transform_8, window_bounds = array<i64: 1, 8, 384>}, {transform_indices = @transform_9, window_bounds = array<i64: 1, 8, 1>}, {transform_indices = @transform_10, window_bounds = array<i64: 1, 8, 1>}]} {
    %c0 = arith.constant 0 : index
    %c0_0 = arith.constant 0 : index
    %0 = vector.load %arg8[%c0, %c0_0] : memref<1x384xf32, #tpu.memory_space<vmem>>, vector<1x384xf32>
    %cst = arith.constant 0.000000e+00 : bf16
    %1 = vector.broadcast %cst : bf16 to vector<8x128xbf16>
    %c0_1 = arith.constant 0 : index
    %c0_2 = arith.constant 0 : index
    %2 = vector.load %arg12[%c0_1, %c0_2] : memref<8x640xbf16, #tpu.memory_space<vmem>>, vector<8x128xbf16>
    tpu.vector_store %arg12[%c0_1, %c0_2], %1 {strides = array<i32>} : memref<8x640xbf16, #tpu.memory_space<vmem>>, vector<8x128xbf16>,
    %cst_3 = arith.constant 0.000000e+00 : bf16
    %3 = vector.broadcast %cst_3 : bf16 to vector<8x188xbf16>
    %c0_4 = arith.constant 0 : index
    %c452 = arith.constant 452 : index
    %4 = vector.load %arg12[%c0_4, %c452] : memref<8x640xbf16, #tpu.memory_space<vmem>>, vector<8x188xbf16>
    tpu.vector_store %arg12[%c0_4, %c452], %3 {strides = array<i32>} : memref<8x640xbf16, #tpu.memory_space<vmem>>, vector<8x188xbf16>,
    %c0_5 = arith.constant 0 : index
    %c0_6 = arith.constant 0 : index
    %c0_7 = arith.constant 0 : index
    %5 = vector.load %arg2[%c0_5, %c0_6, %c0_7] : memref<1x8x324xf32, #tpu.memory_space<vmem>>, vector<1x8x324xf32>
    %6 = vector.shape_cast %5 : vector<1x8x324xf32> to vector<8x324xf32>
    %7 = arith.truncf %6 : vector<8x324xf32> to vector<8x324xbf16>
    %c0_8 = arith.constant 0 : index
    %c128 = arith.constant 128 : index
    %8 = vector.load %arg12[%c0_8, %c128] : memref<8x640xbf16, #tpu.memory_space<vmem>>, vector<8x324xbf16>
    tpu.vector_store %arg12[%c0_8, %c128], %7 {strides = array<i32>} : memref<8x640xbf16, #tpu.memory_space<vmem>>, vector<8x324xbf16>,
    %c0_9 = arith.constant 0 : index
    %c109 = arith.constant 109 : index
    %9 = vector.load %arg12[%c0_9, %c109] : memref<8x640xbf16, #tpu.memory_space<vmem>>, vector<8x384xbf16>
    %c0_10 = arith.constant 0 : index
    %c0_11 = arith.constant 0 : index
    %10 = vector.load %arg14[%c0_10, %c0_11] : memref<72x384xbf16, #tpu.memory_space<vmem>>, vector<8x384xbf16>
    tpu.vector_store %arg14[%c0_10, %c0_11], %9 {strides = array<i32>} : memref<72x384xbf16, #tpu.memory_space<vmem>>, vector<8x384xbf16>,
    %c0_12 = arith.constant 0 : index
    %c110 = arith.constant 110 : index
    %11 = vector.load %arg12[%c0_12, %c110] : memref<8x640xbf16, #tpu.memory_space<vmem>>, vector<8x384xbf16>
    %c8 = arith.constant 8 : index
    %c0_13 = arith.constant 0 : index
    %12 = vector.load %arg14[%c8, %c0_13] : memref<72x384xbf16, #tpu.memory_space<vmem>>, vector<8x384xbf16>
    tpu.vector_store %arg14[%c8, %c0_13], %11 {strides = array<i32>} : memref<72x384xbf16, #tpu.memory_space<vmem>>, vector<8x384xbf16>,
    %c0_14 = arith.constant 0 : index
    %c111 = arith.constant 111 : index
    %13 = vector.load %arg12[%c0_14, %c111] : memref<8x640xbf16, #tpu.memory_space<vmem>>, vector<8x384xbf16>
    %c16 = arith.constant 16 : index
    %c0_15 = arith.constant 0 : index
    %14 = vector.load %arg14[%c16, %c0_15] : memref<72x384xbf16, #tpu.memory_space<vmem>>, vector<8x384xbf16>
    tpu.vector_store %arg14[%c16, %c0_15], %13 {strides = array<i32>} : memref<72x384xbf16, #tpu.memory_space<vmem>>, vector<8x384xbf16>,
    %c0_16 = arith.constant 0 : index
    %c127 = arith.constant 127 : index
    %15 = vector.load %arg12[%c0_16, %c127] : memref<8x640xbf16, #tpu.memory_space<vmem>>, vector<8x384xbf16>
    %c24 = arith.constant 24 : index
    %c0_17 = arith.constant 0 : index
    %16 = vector.load %arg14[%c24, %c0_17] : memref<72x384xbf16, #tpu.memory_space<vmem>>, vector<8x384xbf16>
    tpu.vector_store %arg14[%c24, %c0_17], %15 {strides = array<i32>} : memref<72x384xbf16, #tpu.memory_space<vmem>>, vector<8x384xbf16>,
    %c0_18 = arith.constant 0 : index
    %c128_19 = arith.constant 128 : index
    %17 = vector.load %arg12[%c0_18, %c128_19] : memref<8x640xbf16, #tpu.memory_space<vmem>>, vector<8x384xbf16>
    %c32 = arith.constant 32 : index
    %c0_20 = arith.constant 0 : index
    %18 = vector.load %arg14[%c32, %c0_20] : memref<72x384xbf16, #tpu.memory_space<vmem>>, vector<8x384xbf16>
    tpu.vector_store %arg14[%c32, %c0_20], %17 {strides = array<i32>} : memref<72x384xbf16, #tpu.memory_space<vmem>>, vector<8x384xbf16>,
    %c0_21 = arith.constant 0 : index
    %c129 = arith.constant 129 : index
    %19 = vector.load %arg12[%c0_21, %c129] : memref<8x640xbf16, #tpu.memory_space<vmem>>, vector<8x384xbf16>
    %c40 = arith.constant 40 : index
    %c0_22 = arith.constant 0 : index
    %20 = vector.load %arg14[%c40, %c0_22] : memref<72x384xbf16, #tpu.memory_space<vmem>>, vector<8x384xbf16>
    tpu.vector_store %arg14[%c40, %c0_22], %19 {strides = array<i32>} : memref<72x384xbf16, #tpu.memory_space<vmem>>, vector<8x384xbf16>,
    %c0_23 = arith.constant 0 : index
    %c145 = arith.constant 145 : index
    %21 = vector.load %arg12[%c0_23, %c145] : memref<8x640xbf16, #tpu.memory_space<vmem>>, vector<8x384xbf16>
    %c48 = arith.constant 48 : index
    %c0_24 = arith.constant 0 : index
    %22 = vector.load %arg14[%c48, %c0_24] : memref<72x384xbf16, #tpu.memory_space<vmem>>, vector<8x384xbf16>
    tpu.vector_store %arg14[%c48, %c0_24], %21 {strides = array<i32>} : memref<72x384xbf16, #tpu.memory_space<vmem>>, vector<8x384xbf16>,
    %c0_25 = arith.constant 0 : index
    %c146 = arith.constant 146 : index
    %23 = vector.load %arg12[%c0_25, %c146] : memref<8x640xbf16, #tpu.memory_space<vmem>>, vector<8x384xbf16>
    %c56 = arith.constant 56 : index
    %c0_26 = arith.constant 0 : index
    %24 = vector.load %arg14[%c56, %c0_26] : memref<72x384xbf16, #tpu.memory_space<vmem>>, vector<8x384xbf16>
    tpu.vector_store %arg14[%c56, %c0_26], %23 {strides = array<i32>} : memref<72x384xbf16, #tpu.memory_space<vmem>>, vector<8x384xbf16>,
    %c0_27 = arith.constant 0 : index
    %c147 = arith.constant 147 : index
    %25 = vector.load %arg12[%c0_27, %c147] : memref<8x640xbf16, #tpu.memory_space<vmem>>, vector<8x384xbf16>
    %c64 = arith.constant 64 : index
    %c0_28 = arith.constant 0 : index
    %26 = vector.load %arg14[%c64, %c0_28] : memref<72x384xbf16, #tpu.memory_space<vmem>>, vector<8x384xbf16>
    tpu.vector_store %arg14[%c64, %c0_28], %25 {strides = array<i32>} : memref<72x384xbf16, #tpu.memory_space<vmem>>, vector<8x384xbf16>,
    %c0_29 = arith.constant 0 : index
    %c0_30 = arith.constant 0 : index
    %27 = vector.load %arg4[%c0_29, %c0_30] : memref<4x72xbf16, #tpu.memory_space<vmem>>, vector<4x72xbf16>
    %c0_31 = arith.constant 0 : index
    %c0_32 = arith.constant 0 : index
    %28 = vector.load %arg14[%c0_31, %c0_32] : memref<72x384xbf16, #tpu.memory_space<vmem>>, vector<72x384xbf16>
    %cst_33 = arith.constant dense<0.000000e+00> : vector<4x384xf32>
    %29 = tpu.matmul %27, %28, %cst_33 {dimension_numbers = #tpu.dot_dimension_numbers<[1], [0], [0], [1], [0, 0, 1, 1], [], []>} : vector<4x72xbf16>, vector<72x384xbf16>, vector<4x384xf32> -> vector<4x384xf32>
    %c0_34 = arith.constant 0 : index
    %c0_35 = arith.constant 0 : index
    %30 = vector.load %arg5[%c0_34, %c0_35] : memref<4x1xf32, #tpu.memory_space<vmem>>, vector<4x1xf32>
    %31 = vector.broadcast %30 : vector<4x1xf32> to vector<4x384xf32>
    %32 = arith.addf %29, %31 : vector<4x384xf32>
    %33 = vector.broadcast %0 : vector<1x384xf32> to vector<4x384xf32>
    %34 = arith.mulf %32, %33 : vector<4x384xf32>
    %cst_36 = arith.constant 0.000000e+00 : bf16
    %35 = vector.broadcast %cst_36 : bf16 to vector<8x146xbf16>
    %c0_37 = arith.constant 0 : index
    %c0_38 = arith.constant 0 : index
    %36 = vector.load %arg13[%c0_37, %c0_38] : memref<8x640xbf16, #tpu.memory_space<vmem>>, vector<8x146xbf16>
    tpu.vector_store %arg13[%c0_37, %c0_38], %35 {strides = array<i32>} : memref<8x640xbf16, #tpu.memory_space<vmem>>, vector<8x146xbf16>,
    %cst_39 = arith.constant 0.000000e+00 : bf16
    %37 = vector.broadcast %cst_39 : bf16 to vector<8x206xbf16>
    %c0_40 = arith.constant 0 : index
    %c434 = arith.constant 434 : index
    %38 = vector.load %arg13[%c0_40, %c434] : memref<8x640xbf16, #tpu.memory_space<vmem>>, vector<8x206xbf16>
    tpu.vector_store %arg13[%c0_40, %c434], %37 {strides = array<i32>} : memref<8x640xbf16, #tpu.memory_space<vmem>>, vector<8x206xbf16>,
    %39 = arith.truncf %34 : vector<4x384xf32> to vector<4x384xbf16>
    %c0_41 = arith.constant 0 : index
    %c128_42 = arith.constant 128 : index
    %40 = vector.load %arg13[%c0_41, %c128_42] : memref<8x640xbf16, #tpu.memory_space<vmem>>, vector<4x384xbf16>
    tpu.vector_store %arg13[%c0_41, %c128_42], %39 {strides = array<i32>} : memref<8x640xbf16, #tpu.memory_space<vmem>>, vector<4x384xbf16>,
    %c0_43 = arith.constant 0 : index
    %c0_44 = arith.constant 0 : index
    %41 = vector.load %arg3[%c0_43, %c0_44] : memref<8x18xbf16, #tpu.memory_space<vmem>>, vector<8x18xbf16>
    %c0_45 = arith.constant 0 : index
    %c0_46 = arith.constant 0 : index
    %c0_47 = arith.constant 0 : index
    %42 = vector.load %arg1[%c0_45, %c0_46, %c0_47] : memref<1x32x8xf32, #tpu.memory_space<vmem>>, vector<1x32x8xf32>
    %43 = vector.shape_cast %42 : vector<1x32x8xf32> to vector<32x8xf32>
    %44 = arith.truncf %43 : vector<32x8xf32> to vector<32x8xbf16>
    %cst_48 = arith.constant dense<0.000000e+00> : vector<32x18xf32>
    %45 = tpu.matmul %44, %41, %cst_48 {dimension_numbers = #tpu.dot_dimension_numbers<[1], [0], [0], [1], [0, 0, 1, 1], [], []>} : vector<32x8xbf16>, vector<8x18xbf16>, vector<32x18xf32> -> vector<32x18xf32>
    %46 = vector.extract_strided_slice %45 {offsets = [0, 0], sizes = [4, 18], strides = [1, 1]} : vector<32x18xf32> to vector<4x18xf32>
    %47 = arith.truncf %46 : vector<4x18xf32> to vector<4x18xbf16>
    %c4 = arith.constant 4 : index
    %c146_49 = arith.constant 146 : index
    %48 = vector.load %arg13[%c4, %c146_49] : memref<8x640xbf16, #tpu.memory_space<vmem>>, vector<4x18xbf16>
    tpu.vector_store %arg13[%c4, %c146_49], %47 {strides = array<i32>} : memref<8x640xbf16, #tpu.memory_space<vmem>>, vector<4x18xbf16>,
    %49 = vector.extract_strided_slice %45 {offsets = [0, 0], sizes = [4, 18], strides = [1, 1]} : vector<32x18xf32> to vector<4x18xf32>
    %cst_50 = arith.constant 0.533333361 : f32
    %50 = vector.broadcast %cst_50 : f32 to vector<4x18xf32>
    %51 = arith.mulf %50, %49 : vector<4x18xf32>
    %52 = vector.extract_strided_slice %45 {offsets = [4, 0], sizes = [4, 18], strides = [1, 1]} : vector<32x18xf32> to vector<4x18xf32>
    %cst_51 = arith.constant 0.466666669 : f32
    %53 = vector.broadcast %cst_51 : f32 to vector<4x18xf32>
    %54 = arith.mulf %53, %52 : vector<4x18xf32>
    %55 = arith.addf %51, %54 : vector<4x18xf32>
    %56 = arith.truncf %55 : vector<4x18xf32> to vector<4x18xbf16>
    %c4_52 = arith.constant 4 : index
    %c164 = arith.constant 164 : index
    %57 = vector.load %arg13[%c4_52, %c164] : memref<8x640xbf16, #tpu.memory_space<vmem>>, vector<4x18xbf16>
    tpu.vector_store %arg13[%c4_52, %c164], %56 {strides = array<i32>} : memref<8x640xbf16, #tpu.memory_space<vmem>>, vector<4x18xbf16>,
    %58 = vector.extract_strided_slice %45 {offsets = [0, 0], sizes = [4, 18], strides = [1, 1]} : vector<32x18xf32> to vector<4x18xf32>
    %cst_53 = arith.constant 0.0666666701 : f32
    %59 = vector.broadcast %cst_53 : f32 to vector<4x18xf32>
    %60 = arith.mulf %59, %58 : vector<4x18xf32>
    %61 = vector.extract_strided_slice %45 {offsets = [4, 0], sizes = [4, 18], strides = [1, 1]} : vector<32x18xf32> to vector<4x18xf32>
    %cst_54 = arith.constant 0.933333337 : f32
    %62 = vector.broadcast %cst_54 : f32 to vector<4x18xf32>
    %63 = arith.mulf %62, %61 : vector<4x18xf32>
    %64 = arith.addf %60, %63 : vector<4x18xf32>
    %65 = arith.truncf %64 : vector<4x18xf32> to vector<4x18xbf16>
    %c4_55 = arith.constant 4 : index
    %c182 = arith.constant 182 : index
    %66 = vector.load %arg13[%c4_55, %c182] : memref<8x640xbf16, #tpu.memory_space<vmem>>, vector<4x18xbf16>
    tpu.vector_store %arg13[%c4_55, %c182], %65 {strides = array<i32>} : memref<8x640xbf16, #tpu.memory_space<vmem>>, vector<4x18xbf16>,
    %67 = vector.extract_strided_slice %45 {offsets = [4, 0], sizes = [4, 18], strides = [1, 1]} : vector<32x18xf32> to vector<4x18xf32>
    %cst_56 = arith.constant 6.000000e-01 : f32
    %68 = vector.broadcast %cst_56 : f32 to vector<4x18xf32>
    %69 = arith.mulf %68, %67 : vector<4x18xf32>
    %70 = vector.extract_strided_slice %45 {offsets = [8, 0], sizes = [4, 18], strides = [1, 1]} : vector<32x18xf32> to vector<4x18xf32>
    %cst_57 = arith.constant 4.000000e-01 : f32
    %71 = vector.broadcast %cst_57 : f32 to vector<4x18xf32>
    %72 = arith.mulf %71, %70 : vector<4x18xf32>
    %73 = arith.addf %69, %72 : vector<4x18xf32>
    %74 = arith.truncf %73 : vector<4x18xf32> to vector<4x18xbf16>
    %c4_58 = arith.constant 4 : index
    %c200 = arith.constant 200 : index
    %75 = vector.load %arg13[%c4_58, %c200] : memref<8x640xbf16, #tpu.memory_space<vmem>>, vector<4x18xbf16>
    tpu.vector_store %arg13[%c4_58, %c200], %74 {strides = array<i32>} : memref<8x640xbf16, #tpu.memory_space<vmem>>, vector<4x18xbf16>,
    %76 = vector.extract_strided_slice %45 {offsets = [4, 0], sizes = [4, 18], strides = [1, 1]} : vector<32x18xf32> to vector<4x18xf32>
    %cst_59 = arith.constant 0.13333334 : f32
    %77 = vector.broadcast %cst_59 : f32 to vector<4x18xf32>
    %78 = arith.mulf %77, %76 : vector<4x18xf32>
    %79 = vector.extract_strided_slice %45 {offsets = [8, 0], sizes = [4, 18], strides = [1, 1]} : vector<32x18xf32> to vector<4x18xf32>
    %cst_60 = arith.constant 0.866666674 : f32
    %80 = vector.broadcast %cst_60 : f32 to vector<4x18xf32>
    %81 = arith.mulf %80, %79 : vector<4x18xf32>
    %82 = arith.addf %78, %81 : vector<4x18xf32>
    %83 = arith.truncf %82 : vector<4x18xf32> to vector<4x18xbf16>
    %c4_61 = arith.constant 4 : index
    %c218 = arith.constant 218 : index
    %84 = vector.load %arg13[%c4_61, %c218] : memref<8x640xbf16, #tpu.memory_space<vmem>>, vector<4x18xbf16>
    tpu.vector_store %arg13[%c4_61, %c218], %83 {strides = array<i32>} : memref<8x640xbf16, #tpu.memory_space<vmem>>, vector<4x18xbf16>,
    %85 = vector.extract_strided_slice %45 {offsets = [8, 0], sizes = [4, 18], strides = [1, 1]} : vector<32x18xf32> to vector<4x18xf32>
    %cst_62 = arith.constant 0.666666686 : f32
    %86 = vector.broadcast %cst_62 : f32 to vector<4x18xf32>
    %87 = arith.mulf %86, %85 : vector<4x18xf32>
    %88 = vector.extract_strided_slice %45 {offsets = [12, 0], sizes = [4, 18], strides = [1, 1]} : vector<32x18xf32> to vector<4x18xf32>
    %cst_63 = arith.constant 0.333333343 : f32
    %89 = vector.broadcast %cst_63 : f32 to vector<4x18xf32>
    %90 = arith.mulf %89, %88 : vector<4x18xf32>
    %91 = arith.addf %87, %90 : vector<4x18xf32>
    %92 = arith.truncf %91 : vector<4x18xf32> to vector<4x18xbf16>
    %c4_64 = arith.constant 4 : index
    %c236 = arith.constant 236 : index
    %93 = vector.load %arg13[%c4_64, %c236] : memref<8x640xbf16, #tpu.memory_space<vmem>>, vector<4x18xbf16>
    tpu.vector_store %arg13[%c4_64, %c236], %92 {strides = array<i32>} : memref<8x640xbf16, #tpu.memory_space<vmem>>, vector<4x18xbf16>,
    %94 = vector.extract_strided_slice %45 {offsets = [8, 0], sizes = [4, 18], strides = [1, 1]} : vector<32x18xf32> to vector<4x18xf32>
    %cst_65 = arith.constant 2.000000e-01 : f32
    %95 = vector.broadcast %cst_65 : f32 to vector<4x18xf32>
    %96 = arith.mulf %95, %94 : vector<4x18xf32>
    %97 = vector.extract_strided_slice %45 {offsets = [12, 0], sizes = [4, 18], strides = [1, 1]} : vector<32x18xf32> to vector<4x18xf32>
    %cst_66 = arith.constant 8.000000e-01 : f32
    %98 = vector.broadcast %cst_66 : f32 to vector<4x18xf32>
    %99 = arith.mulf %98, %97 : vector<4x18xf32>
    %100 = arith.addf %96, %99 : vector<4x18xf32>
    %101 = arith.truncf %100 : vector<4x18xf32> to vector<4x18xbf16>
    %c4_67 = arith.constant 4 : index
    %c254 = arith.constant 254 : index
    %102 = vector.load %arg13[%c4_67, %c254] : memref<8x640xbf16, #tpu.memory_space<vmem>>, vector<4x18xbf16>
    tpu.vector_store %arg13[%c4_67, %c254], %101 {strides = array<i32>} : memref<8x640xbf16, #tpu.memory_space<vmem>>, vector<4x18xbf16>,
    %103 = vector.extract_strided_slice %45 {offsets = [12, 0], sizes = [4, 18], strides = [1, 1]} : vector<32x18xf32> to vector<4x18xf32>
    %cst_68 = arith.constant 0.733333349 : f32
    %104 = vector.broadcast %cst_68 : f32 to vector<4x18xf32>
    %105 = arith.mulf %104, %103 : vector<4x18xf32>
    %106 = vector.extract_strided_slice %45 {offsets = [16, 0], sizes = [4, 18], strides = [1, 1]} : vector<32x18xf32> to vector<4x18xf32>
    %cst_69 = arith.constant 0.266666681 : f32
    %107 = vector.broadcast %cst_69 : f32 to vector<4x18xf32>
    %108 = arith.mulf %107, %106 : vector<4x18xf32>
    %109 = arith.addf %105, %108 : vector<4x18xf32>
    %110 = arith.truncf %109 : vector<4x18xf32> to vector<4x18xbf16>
    %c4_70 = arith.constant 4 : index
    %c272 = arith.constant 272 : index
    %111 = vector.load %arg13[%c4_70, %c272] : memref<8x640xbf16, #tpu.memory_space<vmem>>, vector<4x18xbf16>
    tpu.vector_store %arg13[%c4_70, %c272], %110 {strides = array<i32>} : memref<8x640xbf16, #tpu.memory_space<vmem>>, vector<4x18xbf16>,
    %112 = vector.extract_strided_slice %45 {offsets = [12, 0], sizes = [4, 18], strides = [1, 1]} : vector<32x18xf32> to vector<4x18xf32>
    %cst_71 = arith.constant 0.266666681 : f32
    %113 = vector.broadcast %cst_71 : f32 to vector<4x18xf32>
    %114 = arith.mulf %113, %112 : vector<4x18xf32>
    %115 = vector.extract_strided_slice %45 {offsets = [16, 0], sizes = [4, 18], strides = [1, 1]} : vector<32x18xf32> to vector<4x18xf32>
    %cst_72 = arith.constant 0.733333349 : f32
    %116 = vector.broadcast %cst_72 : f32 to vector<4x18xf32>
    %117 = arith.mulf %116, %115 : vector<4x18xf32>
    %118 = arith.addf %114, %117 : vector<4x18xf32>
    %119 = arith.truncf %118 : vector<4x18xf32> to vector<4x18xbf16>
    %c4_73 = arith.constant 4 : index
    %c290 = arith.constant 290 : index
    %120 = vector.load %arg13[%c4_73, %c290] : memref<8x640xbf16, #tpu.memory_space<vmem>>, vector<4x18xbf16>
    tpu.vector_store %arg13[%c4_73, %c290], %119 {strides = array<i32>} : memref<8x640xbf16, #tpu.memory_space<vmem>>, vector<4x18xbf16>,
    %121 = vector.extract_strided_slice %45 {offsets = [16, 0], sizes = [4, 18], strides = [1, 1]} : vector<32x18xf32> to vector<4x18xf32>
    %cst_74 = arith.constant 8.000000e-01 : f32
    %122 = vector.broadcast %cst_74 : f32 to vector<4x18xf32>
    %123 = arith.mulf %122, %121 : vector<4x18xf32>
    %124 = vector.extract_strided_slice %45 {offsets = [20, 0], sizes = [4, 18], strides = [1, 1]} : vector<32x18xf32> to vector<4x18xf32>
    %cst_75 = arith.constant 2.000000e-01 : f32
    %125 = vector.broadcast %cst_75 : f32 to vector<4x18xf32>
    %126 = arith.mulf %125, %124 : vector<4x18xf32>
    %127 = arith.addf %123, %126 : vector<4x18xf32>
    %128 = arith.truncf %127 : vector<4x18xf32> to vector<4x18xbf16>
    %c4_76 = arith.constant 4 : index
    %c308 = arith.constant 308 : index
    %129 = vector.load %arg13[%c4_76, %c308] : memref<8x640xbf16, #tpu.memory_space<vmem>>, vector<4x18xbf16>
    tpu.vector_store %arg13[%c4_76, %c308], %128 {strides = array<i32>} : memref<8x640xbf16, #tpu.memory_space<vmem>>, vector<4x18xbf16>,
    %130 = vector.extract_strided_slice %45 {offsets = [16, 0], sizes = [4, 18], strides = [1, 1]} : vector<32x18xf32> to vector<4x18xf32>
    %cst_77 = arith.constant 0.333333343 : f32
    %131 = vector.broadcast %cst_77 : f32 to vector<4x18xf32>
    %132 = arith.mulf %131, %130 : vector<4x18xf32>
    %133 = vector.extract_strided_slice %45 {offsets = [20, 0], sizes = [4, 18], strides = [1, 1]} : vector<32x18xf32> to vector<4x18xf32>
    %cst_78 = arith.constant 0.666666686 : f32
    %134 = vector.broadcast %cst_78 : f32 to vector<4x18xf32>
    %135 = arith.mulf %134, %133 : vector<4x18xf32>
    %136 = arith.addf %132, %135 : vector<4x18xf32>
    %137 = arith.truncf %136 : vector<4x18xf32> to vector<4x18xbf16>
    %c4_79 = arith.constant 4 : index
    %c326 = arith.constant 326 : index
    %138 = vector.load %arg13[%c4_79, %c326] : memref<8x640xbf16, #tpu.memory_space<vmem>>, vector<4x18xbf16>
    tpu.vector_store %arg13[%c4_79, %c326], %137 {strides = array<i32>} : memref<8x640xbf16, #tpu.memory_space<vmem>>, vector<4x18xbf16>,
    %139 = vector.extract_strided_slice %45 {offsets = [20, 0], sizes = [4, 18], strides = [1, 1]} : vector<32x18xf32> to vector<4x18xf32>
    %cst_80 = arith.constant 0.866666674 : f32
    %140 = vector.broadcast %cst_80 : f32 to vector<4x18xf32>
    %141 = arith.mulf %140, %139 : vector<4x18xf32>
    %142 = vector.extract_strided_slice %45 {offsets = [24, 0], sizes = [4, 18], strides = [1, 1]} : vector<32x18xf32> to vector<4x18xf32>
    %cst_81 = arith.constant 0.13333334 : f32
    %143 = vector.broadcast %cst_81 : f32 to vector<4x18xf32>
    %144 = arith.mulf %143, %142 : vector<4x18xf32>
    %145 = arith.addf %141, %144 : vector<4x18xf32>
    %146 = arith.truncf %145 : vector<4x18xf32> to vector<4x18xbf16>
    %c4_82 = arith.constant 4 : index
    %c344 = arith.constant 344 : index
    %147 = vector.load %arg13[%c4_82, %c344] : memref<8x640xbf16, #tpu.memory_space<vmem>>, vector<4x18xbf16>
    tpu.vector_store %arg13[%c4_82, %c344], %146 {strides = array<i32>} : memref<8x640xbf16, #tpu.memory_space<vmem>>, vector<4x18xbf16>,
    %148 = vector.extract_strided_slice %45 {offsets = [20, 0], sizes = [4, 18], strides = [1, 1]} : vector<32x18xf32> to vector<4x18xf32>
    %cst_83 = arith.constant 4.000000e-01 : f32
    %149 = vector.broadcast %cst_83 : f32 to vector<4x18xf32>
    %150 = arith.mulf %149, %148 : vector<4x18xf32>
    %151 = vector.extract_strided_slice %45 {offsets = [24, 0], sizes = [4, 18], strides = [1, 1]} : vector<32x18xf32> to vector<4x18xf32>
    %cst_84 = arith.constant 6.000000e-01 : f32
    %152 = vector.broadcast %cst_84 : f32 to vector<4x18xf32>
    %153 = arith.mulf %152, %151 : vector<4x18xf32>
    %154 = arith.addf %150, %153 : vector<4x18xf32>
    %155 = arith.truncf %154 : vector<4x18xf32> to vector<4x18xbf16>
    %c4_85 = arith.constant 4 : index
    %c362 = arith.constant 362 : index
    %156 = vector.load %arg13[%c4_85, %c362] : memref<8x640xbf16, #tpu.memory_space<vmem>>, vector<4x18xbf16>
    tpu.vector_store %arg13[%c4_85, %c362], %155 {strides = array<i32>} : memref<8x640xbf16, #tpu.memory_space<vmem>>, vector<4x18xbf16>,
    %157 = vector.extract_strided_slice %45 {offsets = [24, 0], sizes = [4, 18], strides = [1, 1]} : vector<32x18xf32> to vector<4x18xf32>
    %cst_86 = arith.constant 0.933333337 : f32
    %158 = vector.broadcast %cst_86 : f32 to vector<4x18xf32>
    %159 = arith.mulf %158, %157 : vector<4x18xf32>
    %160 = vector.extract_strided_slice %45 {offsets = [28, 0], sizes = [4, 18], strides = [1, 1]} : vector<32x18xf32> to vector<4x18xf32>
    %cst_87 = arith.constant 0.0666666701 : f32
    %161 = vector.broadcast %cst_87 : f32 to vector<4x18xf32>
    %162 = arith.mulf %161, %160 : vector<4x18xf32>
    %163 = arith.addf %159, %162 : vector<4x18xf32>
    %164 = arith.truncf %163 : vector<4x18xf32> to vector<4x18xbf16>
    %c4_88 = arith.constant 4 : index
    %c380 = arith.constant 380 : index
    %165 = vector.load %arg13[%c4_88, %c380] : memref<8x640xbf16, #tpu.memory_space<vmem>>, vector<4x18xbf16>
    tpu.vector_store %arg13[%c4_88, %c380], %164 {strides = array<i32>} : memref<8x640xbf16, #tpu.memory_space<vmem>>, vector<4x18xbf16>,
    %166 = vector.extract_strided_slice %45 {offsets = [24, 0], sizes = [4, 18], strides = [1, 1]} : vector<32x18xf32> to vector<4x18xf32>
    %cst_89 = arith.constant 0.466666669 : f32
    %167 = vector.broadcast %cst_89 : f32 to vector<4x18xf32>
    %168 = arith.mulf %167, %166 : vector<4x18xf32>
    %169 = vector.extract_strided_slice %45 {offsets = [28, 0], sizes = [4, 18], strides = [1, 1]} : vector<32x18xf32> to vector<4x18xf32>
    %cst_90 = arith.constant 0.533333361 : f32
    %170 = vector.broadcast %cst_90 : f32 to vector<4x18xf32>
    %171 = arith.mulf %170, %169 : vector<4x18xf32>
    %172 = arith.addf %168, %171 : vector<4x18xf32>
    %173 = arith.truncf %172 : vector<4x18xf32> to vector<4x18xbf16>
    %c4_91 = arith.constant 4 : index
    %c398 = arith.constant 398 : index
    %174 = vector.load %arg13[%c4_91, %c398] : memref<8x640xbf16, #tpu.memory_space<vmem>>, vector<4x18xbf16>
    tpu.vector_store %arg13[%c4_91, %c398], %173 {strides = array<i32>} : memref<8x640xbf16, #tpu.memory_space<vmem>>, vector<4x18xbf16>,
    %175 = vector.extract_strided_slice %45 {offsets = [28, 0], sizes = [4, 18], strides = [1, 1]} : vector<32x18xf32> to vector<4x18xf32>
    %176 = arith.truncf %175 : vector<4x18xf32> to vector<4x18xbf16>
    %c4_92 = arith.constant 4 : index
    %c416 = arith.constant 416 : index
    %177 = vector.load %arg13[%c4_92, %c416] : memref<8x640xbf16, #tpu.memory_space<vmem>>, vector<4x18xbf16>
    tpu.vector_store %arg13[%c4_92, %c416], %176 {strides = array<i32>} : memref<8x640xbf16, #tpu.memory_space<vmem>>, vector<4x18xbf16>,
    %c0_93 = arith.constant 0 : index
    %c109_94 = arith.constant 109 : index
    %178 = vector.load %arg13[%c0_93, %c109_94] : memref<8x640xbf16, #tpu.memory_space<vmem>>, vector<8x384xbf16>
    %c0_95 = arith.constant 0 : index
    %c0_96 = arith.constant 0 : index
    %179 = vector.load %arg14[%c0_95, %c0_96] : memref<72x384xbf16, #tpu.memory_space<vmem>>, vector<8x384xbf16>
    tpu.vector_store %arg14[%c0_95, %c0_96], %178 {strides = array<i32>} : memref<72x384xbf16, #tpu.memory_space<vmem>>, vector<8x384xbf16>,
    %c0_97 = arith.constant 0 : index
    %c110_98 = arith.constant 110 : index
    %180 = vector.load %arg13[%c0_97, %c110_98] : memref<8x640xbf16, #tpu.memory_space<vmem>>, vector<8x384xbf16>
    %c8_99 = arith.constant 8 : index
    %c0_100 = arith.constant 0 : index
    %181 = vector.load %arg14[%c8_99, %c0_100] : memref<72x384xbf16, #tpu.memory_space<vmem>>, vector<8x384xbf16>
    tpu.vector_store %arg14[%c8_99, %c0_100], %180 {strides = array<i32>} : memref<72x384xbf16, #tpu.memory_space<vmem>>, vector<8x384xbf16>,
    %c0_101 = arith.constant 0 : index
    %c111_102 = arith.constant 111 : index
    %182 = vector.load %arg13[%c0_101, %c111_102] : memref<8x640xbf16, #tpu.memory_space<vmem>>, vector<8x384xbf16>
    %c16_103 = arith.constant 16 : index
    %c0_104 = arith.constant 0 : index
    %183 = vector.load %arg14[%c16_103, %c0_104] : memref<72x384xbf16, #tpu.memory_space<vmem>>, vector<8x384xbf16>
    tpu.vector_store %arg14[%c16_103, %c0_104], %182 {strides = array<i32>} : memref<72x384xbf16, #tpu.memory_space<vmem>>, vector<8x384xbf16>,
    %c0_105 = arith.constant 0 : index
    %c127_106 = arith.constant 127 : index
    %184 = vector.load %arg13[%c0_105, %c127_106] : memref<8x640xbf16, #tpu.memory_space<vmem>>, vector<8x384xbf16>
    %c24_107 = arith.constant 24 : index
    %c0_108 = arith.constant 0 : index
    %185 = vector.load %arg14[%c24_107, %c0_108] : memref<72x384xbf16, #tpu.memory_space<vmem>>, vector<8x384xbf16>
    tpu.vector_store %arg14[%c24_107, %c0_108], %184 {strides = array<i32>} : memref<72x384xbf16, #tpu.memory_space<vmem>>, vector<8x384xbf16>,
    %c0_109 = arith.constant 0 : index
    %c128_110 = arith.constant 128 : index
    %186 = vector.load %arg13[%c0_109, %c128_110] : memref<8x640xbf16, #tpu.memory_space<vmem>>, vector<8x384xbf16>
    %c32_111 = arith.constant 32 : index
    %c0_112 = arith.constant 0 : index
    %187 = vector.load %arg14[%c32_111, %c0_112] : memref<72x384xbf16, #tpu.memory_space<vmem>>, vector<8x384xbf16>
    tpu.vector_store %arg14[%c32_111, %c0_112], %186 {strides = array<i32>} : memref<72x384xbf16, #tpu.memory_space<vmem>>, vector<8x384xbf16>,
    %c0_113 = arith.constant 0 : index
    %c129_114 = arith.constant 129 : index
    %188 = vector.load %arg13[%c0_113, %c129_114] : memref<8x640xbf16, #tpu.memory_space<vmem>>, vector<8x384xbf16>
    %c40_115 = arith.constant 40 : index
    %c0_116 = arith.constant 0 : index
    %189 = vector.load %arg14[%c40_115, %c0_116] : memref<72x384xbf16, #tpu.memory_space<vmem>>, vector<8x384xbf16>
    tpu.vector_store %arg14[%c40_115, %c0_116], %188 {strides = array<i32>} : memref<72x384xbf16, #tpu.memory_space<vmem>>, vector<8x384xbf16>,
    %c0_117 = arith.constant 0 : index
    %c145_118 = arith.constant 145 : index
    %190 = vector.load %arg13[%c0_117, %c145_118] : memref<8x640xbf16, #tpu.memory_space<vmem>>, vector<8x384xbf16>
    %c48_119 = arith.constant 48 : index
    %c0_120 = arith.constant 0 : index
    %191 = vector.load %arg14[%c48_119, %c0_120] : memref<72x384xbf16, #tpu.memory_space<vmem>>, vector<8x384xbf16>
    tpu.vector_store %arg14[%c48_119, %c0_120], %190 {strides = array<i32>} : memref<72x384xbf16, #tpu.memory_space<vmem>>, vector<8x384xbf16>,
    %c0_121 = arith.constant 0 : index
    %c146_122 = arith.constant 146 : index
    %192 = vector.load %arg13[%c0_121, %c146_122] : memref<8x640xbf16, #tpu.memory_space<vmem>>, vector<8x384xbf16>
    %c56_123 = arith.constant 56 : index
    %c0_124 = arith.constant 0 : index
    %193 = vector.load %arg14[%c56_123, %c0_124] : memref<72x384xbf16, #tpu.memory_space<vmem>>, vector<8x384xbf16>
    tpu.vector_store %arg14[%c56_123, %c0_124], %192 {strides = array<i32>} : memref<72x384xbf16, #tpu.memory_space<vmem>>, vector<8x384xbf16>,
    %c0_125 = arith.constant 0 : index
    %c147_126 = arith.constant 147 : index
    %194 = vector.load %arg13[%c0_125, %c147_126] : memref<8x640xbf16, #tpu.memory_space<vmem>>, vector<8x384xbf16>
    %c64_127 = arith.constant 64 : index
    %c0_128 = arith.constant 0 : index
    %195 = vector.load %arg14[%c64_127, %c0_128] : memref<72x384xbf16, #tpu.memory_space<vmem>>, vector<8x384xbf16>
    tpu.vector_store %arg14[%c64_127, %c0_128], %194 {strides = array<i32>} : memref<72x384xbf16, #tpu.memory_space<vmem>>, vector<8x384xbf16>,
    %c0_129 = arith.constant 0 : index
    %c0_130 = arith.constant 0 : index
    %196 = vector.load %arg6[%c0_129, %c0_130] : memref<8x72xbf16, #tpu.memory_space<vmem>>, vector<8x72xbf16>
    %c0_131 = arith.constant 0 : index
    %c0_132 = arith.constant 0 : index
    %197 = vector.load %arg14[%c0_131, %c0_132] : memref<72x384xbf16, #tpu.memory_space<vmem>>, vector<72x384xbf16>
    %cst_133 = arith.constant dense<0.000000e+00> : vector<8x384xf32>
    %198 = tpu.matmul %196, %197, %cst_133 {dimension_numbers = #tpu.dot_dimension_numbers<[1], [0], [0], [1], [0, 0, 1, 1], [], []>} : vector<8x72xbf16>, vector<72x384xbf16>, vector<8x384xf32> -> vector<8x384xf32>
    %c0_134 = arith.constant 0 : index
    %c0_135 = arith.constant 0 : index
    %199 = vector.load %arg7[%c0_134, %c0_135] : memref<8x1xf32, #tpu.memory_space<vmem>>, vector<8x1xf32>
    %200 = vector.broadcast %199 : vector<8x1xf32> to vector<8x384xf32>
    %201 = arith.addf %198, %200 : vector<8x384xf32>
    %202 = vector.broadcast %0 : vector<1x384xf32> to vector<8x384xf32>
    %203 = arith.mulf %201, %202 : vector<8x384xf32>
    %c0_136 = arith.constant 0 : index
    %c0_137 = arith.constant 0 : index
    %c0_138 = arith.constant 0 : index
    %204 = vector.load %arg9[%c0_136, %c0_137, %c0_138] : memref<1x8x384xf32, #tpu.memory_space<vmem>>, vector<1x8x384xf32>
    %205 = vector.shape_cast %204 : vector<1x8x384xf32> to vector<8x384xf32>
    %206 = vector.shape_cast %203 : vector<8x384xf32> to vector<1x8x384xf32>
    tpu.vector_store %arg9[%c0_136, %c0_137, %c0_138], %206 {strides = array<i32>} : memref<1x8x384xf32, #tpu.memory_space<vmem>>, vector<1x8x384xf32>,
    %cst_139 = arith.constant dense<0.000000e+00> : vector<8xf32>
    %207 = vector.multi_reduction <add>, %203, %cst_139 [1] : vector<8x384xf32> to vector<8xf32>
    %208 = vector.shape_cast %207 : vector<8xf32> to vector<8x1xf32>
    %c0_140 = arith.constant 0 : index
    %c0_141 = arith.constant 0 : index
    %c0_142 = arith.constant 0 : index
    %209 = vector.load %arg10[%c0_140, %c0_141, %c0_142] : memref<1x8x1xf32, #tpu.memory_space<vmem>>, vector<1x8x1xf32>
    %210 = vector.shape_cast %209 : vector<1x8x1xf32> to vector<8x1xf32>
    %211 = vector.shape_cast %208 : vector<8x1xf32> to vector<1x8x1xf32>
    tpu.vector_store %arg10[%c0_140, %c0_141, %c0_142], %211 {strides = array<i32>} : memref<1x8x1xf32, #tpu.memory_space<vmem>>, vector<1x8x1xf32>,
    %212 = arith.mulf %203, %203 : vector<8x384xf32>
    %cst_143 = arith.constant dense<0.000000e+00> : vector<8xf32>
    %213 = vector.multi_reduction <add>, %212, %cst_143 [1] : vector<8x384xf32> to vector<8xf32>
    %214 = vector.shape_cast %213 : vector<8xf32> to vector<8x1xf32>
    %c0_144 = arith.constant 0 : index
    %c0_145 = arith.constant 0 : index
    %c0_146 = arith.constant 0 : index
    %215 = vector.load %arg11[%c0_144, %c0_145, %c0_146] : memref<1x8x1xf32, #tpu.memory_space<vmem>>, vector<1x8x1xf32>
    %216 = vector.shape_cast %215 : vector<1x8x1xf32> to vector<8x1xf32>
    %217 = vector.shape_cast %214 : vector<8x1xf32> to vector<1x8x1xf32>
    tpu.vector_store %arg11[%c0_144, %c0_145, %c0_146], %217 {strides = array<i32>} : memref<1x8x1xf32, #tpu.memory_space<vmem>>, vector<1x8x1xf32>,
    return
  }
  func.func @transform_0(%arg0: i32) -> (i32, i32, i32) {
    %c0_i32 = arith.constant 0 : i32
    %c0_i32_0 = arith.constant 0 : i32
    %c0_i32_1 = arith.constant 0 : i32
    return %arg0, %c0_i32, %c0_i32_0 : i32, i32, i32
  }
  func.func @transform_1(%arg0: i32) -> (i32, i32, i32) {
    %c0_i32 = arith.constant 0 : i32
    %c0_i32_0 = arith.constant 0 : i32
    %c0_i32_1 = arith.constant 0 : i32
    return %arg0, %c0_i32, %c0_i32_0 : i32, i32, i32
  }
  func.func @transform_2(%arg0: i32) -> (i32, i32) {
    %c0_i32 = arith.constant 0 : i32
    %c0_i32_0 = arith.constant 0 : i32
    %c0_i32_1 = arith.constant 0 : i32
    return %c0_i32, %c0_i32_0 : i32, i32
  }
  func.func @transform_3(%arg0: i32) -> (i32, i32) {
    %c0_i32 = arith.constant 0 : i32
    %c0_i32_0 = arith.constant 0 : i32
    %c0_i32_1 = arith.constant 0 : i32
    return %c0_i32, %c0_i32_0 : i32, i32
  }
  func.func @transform_4(%arg0: i32) -> (i32, i32) {
    %c0_i32 = arith.constant 0 : i32
    %c0_i32_0 = arith.constant 0 : i32
    %c0_i32_1 = arith.constant 0 : i32
    return %c0_i32, %c0_i32_0 : i32, i32
  }
  func.func @transform_5(%arg0: i32) -> (i32, i32) {
    %c0_i32 = arith.constant 0 : i32
    %c0_i32_0 = arith.constant 0 : i32
    %c0_i32_1 = arith.constant 0 : i32
    return %c0_i32, %c0_i32_0 : i32, i32
  }
  func.func @transform_6(%arg0: i32) -> (i32, i32) {
    %c0_i32 = arith.constant 0 : i32
    %c0_i32_0 = arith.constant 0 : i32
    %c0_i32_1 = arith.constant 0 : i32
    return %c0_i32, %c0_i32_0 : i32, i32
  }
  func.func @transform_7(%arg0: i32) -> (i32, i32) {
    %c0_i32 = arith.constant 0 : i32
    %c0_i32_0 = arith.constant 0 : i32
    %c0_i32_1 = arith.constant 0 : i32
    return %c0_i32, %c0_i32_0 : i32, i32
  }
  func.func @transform_8(%arg0: i32) -> (i32, i32, i32) {
    %c0_i32 = arith.constant 0 : i32
    %c0_i32_0 = arith.constant 0 : i32
    %c0_i32_1 = arith.constant 0 : i32
    return %arg0, %c0_i32, %c0_i32_0 : i32, i32, i32
  }
  func.func @transform_9(%arg0: i32) -> (i32, i32, i32) {
    %c0_i32 = arith.constant 0 : i32
    %c0_i32_0 = arith.constant 0 : i32
    %c0_i32_1 = arith.constant 0 : i32
    return %arg0, %c0_i32, %c0_i32_0 : i32, i32, i32
  }
  func.func @transform_10(%arg0: i32) -> (i32, i32, i32) {
    %c0_i32 = arith.constant 0 : i32
    %c0_i32_0 = arith.constant 0 : i32
    %c0_i32_1 = arith.constant 0 : i32
    return %arg0, %c0_i32, %c0_i32_0 : i32, i32, i32
  }
}

</mosaic_0001>

<bundles_post_ra>
// kernel: tpu_custom_call.1
= control target key start
LH: loop header
LB: loop body
LE: loop exit
PB: predicated region body
PF: predicated region fallthrough
CT: control target
= control target key end

     0   :  { %s2291_s0 = inlined_call_operand.vmem [shape: f32[2,32,8], index: 0, kind: input, shape index: {}]   ;;  %s2292_s1 = inlined_call_operand.vmem [shape: f32[2,8,324], index: 1, kind: input, shape index: {}]   ;;  %s2293_s2 = inlined_call_operand.vmem [shape: bf16[8,18], index: 2, kind: input, shape index: {}]   ;;  %s2294_s3 = inlined_call_operand.vmem [shape: bf16[4,72], index: 3, kind: input, shape index: {}]   ;;  %s2295_s4 = inlined_call_operand.vmem [shape: f32[4,1], index: 4, kind: input, shape index: {}]   ;;  %s2296_s5 = inlined_call_operand.vmem [shape: bf16[8,72], index: 5, kind: input, shape index: {}]   ;;  %s2297_s6 = inlined_call_operand.vmem [shape: f32[8,1], index: 6, kind: input, shape index: {}]   ;;  %s2298_s7 = inlined_call_operand.vmem [shape: f32[1,384], index: 7, kind: input, shape index: {}]   ;;  %s2299_s8 = inlined_call_operand.hbm [shape: f32[2,8,384], index: 8, kind: output, shape index: {0}]   ;;  %s2300_s9 = inlined_call_operand.vmem [shape: f32[2,8,1], index: 9, kind: output, shape index: {1}]   ;;  %s2301_s10 = inlined_call_operand.vmem [shape: f32[2,8,1], index: 10, kind: output, shape index: {2}]  }
   0x1   :  { %2320 = sst [smem:[#allocation8_spill]] %s2291_s0 }
   0x2   :  { %2321 = sst [smem:[#allocation9_spill]] %s2292_s1 }
   0x3   :  { %16 = vsyncpa [#allocation6], 0 }
   0x4   :  { %18 = vsyncpa [#allocation6 + $0x1], 0  ;;  %s1983_s13 = smov 0   ;;  %s1985_s14 = smov 0  }
   0x5   :  { %s1987_s15 = smov 0   ;;  %s1989_s16 = smov 0  }
   0x6 LB: > { %s2004_s17 = sadd.s32 4294967295, %s1899_s16   ;;  %s1617_s18 = sadd.s32 4294967294, %s1899_s16   ;;  %s1899_s16 = sphi %s1989_s16, %s2352_s16   ;;  %s1895_s15 = sphi %s1987_s15, %s2351_s15   ;;  %s1891_s14 = sphi %s1985_s14, %s2350_s14   ;;  %s1887_s13 = sphi %s1983_s13, %s2349_s13  }
   0x7   : > { %s2008_s19 = sadd.s32 1, %s1899_s16   ;;  %s209_s20 = sadd.s32 1, %s1895_s15 }
   0x8   : > { %s206_s21 = ssub.s32 %s1899_s16, %s2008_s19  ;;  %p219_p0 = scmp.ne.s32.totalorder %s1895_s15, %s1891_s14 }
   0x9   : > { %p207_p1 = scmp.eq.s32.totalorder %s206_s21, 0  ;;  %p220_p2 = scmp.eq.s32.totalorder %s2004_s17, 1 }
   0xa   : > { %p225_p3 = scmp.ne.s32.totalorder %s1891_s14, %s1887_s13  ;;  %p226_p4 = scmp.eq.s32.totalorder %s1617_s18, 1 }
   0xb   : > { %s2019_s22 = scalar_select %p207_p1, %s1895_s15, %s209_s20  }
   0xc   : > { %p2021_p5 = por %p220_p2, %p219_p0  ;;  %p2025_p6 = por %p226_p4, %p225_p3 }
   0xd   : > { %p1620_p7 = scmp.ge.s32.totalorder %s1899_s16, 1  ;;  %p330_p8 = scmp.lt.s32.totalorder %s1899_s16, 3 }
   0xf   : > { %p331_p9 = pnand %p1620_p7, %p330_p8 }
  0x10   : > { %p381_p10 = scmp.lt.s32.totalorder (!%p331_p9), %s2004_s17, 1  ;;  %vm402_vm0 = vcmask (!%p331_p9), 1044000   ;;  %vm403_vm1 = vcmask (!%p331_p9), 1047556   ;;  %v1901_v0 = vmov (!%p331_p9), 0   ;;  %s2324_s1 = sld [smem:[#allocation9_spill]] (!%p331_p9)  ;;  %vm423_vm3 = vcmask (!%p331_p9), 551936  }
  0x11   : > { %334 = sbr.rel (%p331_p9) target bundleno = 1099 (0x44b), region = 52  ;;  %401 = vst [vmem:[#allocation2] sm:$0xf] (!%p331_p9), %v1901_v0  ;;  %vm404_vm2 = vmor (!%p331_p9), %vm403_vm1, %vm402_vm0  ;;  %717 = vmatprep.mubr.bf16.mxu0 (!%p331_p9), %v1901_v0  ;;  %1826 = vset.pattern.permute.xlu0 (!%p331_p9), %v1901_v0  ;;  %s1902_s30 = smov (!%p331_p9), 18   ;;  %v1904_v8 = vmov (!%p331_p9), 0.0   ;;  %vm1911_vm4 = vmmov (!%p331_p9), 0  }
  0x12   : > { %405 = vst.msk [vmem:[#allocation2 + $0xc] sm:$0xff] (!%p331_p9), %vm404_vm2, %v1901_v0  ;;  %s1903_s11 = smov (!%p331_p9), 19   ;;  %1723 = vmatprep.subr.bf16.mxu1 (!%p331_p9), %v1904_v8  ;;  %s1905_s12 = smov (!%p331_p9), 17   ;;  %v593_v11 = vld [vmem:[%s2295_s4] sm:$0xf] (!%p331_p9)  ;;  %1733 = vmatprep.mubr.msk.bf16.mxu1 (!%p331_p9), %vm1911_vm4, %v1904_v8  ;;  %vm435_vm5 = vcmask (!%p331_p9), 1043456  }
  0x13   : > { %s2310_s18 = smov (!%p331_p9), 1   ;;  %s2308_s20 = smov (!%p331_p9), 127   ;;  %vm2319_vm6 = vcmask (!%p331_p9), 146432   ;;  %vm437_vm7 = vcmask (!%p331_p9), 154624   ;;  %vm2318_vm8 = vcmask (!%p331_p9), 138240   ;;  %vm2317_vm9 = vcmask (!%p331_p9), 7168  }
  0x14   : > { %s2306_s21 = smov (!%p331_p9), 111   ;;  %s2302_s27 = smov (!%p331_p9), 109   ;;  %vm2316_vm10 = vcmask (!%p331_p9), 1039360   ;;  %vm2315_vm11 = vcmask (!%p331_p9), 908288   ;;  %vm2314_vm12 = vcmask (!%p331_p9), 900096   ;;  %vm2313_vm13 = vcmask (!%p331_p9), 891904  }
  0x15   : > { %s2325_s0 = sld [smem:[#allocation8_spill]] (!%p331_p9)  ;;  %vm2312_vm14 = vcmask (!%p331_p9), 588800   ;;  %vm813_vm15 = vcmask (!%p331_p9), 64512   ;;  %vm785_vm0 = vcmask (!%p331_p9), 146436  }
  0x16   : > { %vm786_vm2 = vmor (!%p331_p9), %vm785_vm0, %vm435_vm5  ;;  %vm912_vm0 = vcmask (!%p331_p9), 585138  }
  0x17   : > { %787 = vst.msk [vmem:[#allocation3] sm:$0xff] (!%p331_p9), %vm786_vm2, %v1901_v0  ;;  %vm927_vm2 = vcmask (!%p331_p9), 732738  }
  0x18   : > { %s2037_s25 = scalar_select %p381_p10, %s2004_s17, 1 }
  0x1a   : > { %s1759_s26 = smul.u32 24, %s2037_s25  ;;  %s1687_s28 = sshll.u32 %s2037_s25, 5 }
  0x1c   : > { %s390_s29 = scalar_lea.vmem %s2324_s1, %s1759_s26  ;;  %s2304_s26 = smov 110  }
  0x1d   : > { %v406_v1 = vld [vmem:[%s390_s29] sm:$0xff]  ;;  %v407_v2 = vld [vmem:[%s390_s29 + $0x8] sm:$0xff]  ;;  %v408_v3 = vld [vmem:[%s390_s29 + $0x10] sm:$0xff]  ;;  %s1913_s29 = smov 16  }
  0x1e   : > { %v2044_v4 = vpack.c.bf16 %v407_v2, %v406_v1  ;;  %v1689_v5 = vpack.c.bf16 %v408_v3, %v408_v3 }
  0x20   : > { %422 = vst [vmem:[#allocation2 + $0x4] sm:$0xff] %v2044_v4  ;;  %424 = vst.msk [vmem:[#allocation2 + $0xc] sm:$0xf] %vm423_vm3, %v1689_v5  ;;  %vm788_vm3 = vcmask 1043856  }
  0x27   : > { %v444_v6 = vld [vmem:[#allocation2] sm:$0xff]  ;;  %v445_v7 = vld [vmem:[#allocation2 + $0x8] sm:$0xff] }
  0x28   : > { %448 = vrot.lane.b32.xlu1 %v444_v6, %s1902_s30  ;;  %429 = vrot.lane.b32.xlu0 %v444_v6, %s1903_s11  ;;  %v499_v9 = vld [vmem:[#allocation2 + $0xc] sm:$0xf] }
  0x29   : > { %501 = vst [vmem:[#allocation4 + $0x38] sm:$0xf] %v499_v9  ;;  %v503_v10 = vld [vmem:[#allocation2 + $0xc] sm:$0xff] }
  0x2c   : > { %450 = vrot.lane.b32.xlu1 %v445_v7, %s1902_s30  ;;  %431 = vrot.lane.b32.xlu0 %v445_v7, %s1903_s11 }
  0x30   : > { %468 = vrot.lane.b32.xlu1 %v445_v7, %s1905_s12  ;;  %466 = vrot.lane.b32.xlu0 %v444_v6, %s1905_s12 }
  0x34   : > { %486 = vrot.lane.b32.xlu1 %v445_v7, %s2310_s18  ;;  %484 = vrot.lane.b32.xlu0 %v444_v6, %s2310_s18  ;;  %s1926_s18 = smov 32  }
  0x38   : > { %508 = vrot.lane.b32.xlu1 %v503_v10, %s2308_s20  ;;  %506 = vrot.lane.b32.xlu0 %v2044_v4, %s2308_s20  ;;  %s1916_s20 = smov 36  }
  0x3c   : > { %526 = vrot.lane.b32.xlu1 %v503_v10, %s2306_s21  ;;  %524 = vrot.lane.b32.xlu0 %v2044_v4, %s2306_s21  ;;  %s1917_s21 = smov 108  }
  0x40   : > { %544 = vrot.lane.b32.xlu1 %v503_v10, %s2304_s26  ;;  %542 = vrot.lane.b32.xlu0 %v2044_v4, %s2304_s26  ;;  %s385_s26 = scalar_lea.vmem %s2325_s0, %s1687_s28  ;;  %s1915_s28 = smov 126  }
  0x44   : > { %562 = vrot.lane.b32.xlu1 %v503_v10, %s2302_s27  ;;  %560 = vrot.lane.b32.xlu0 %v2044_v4, %s2302_s27  ;;  %s1914_s27 = smov 52  }
  0x48   : > { %596 = vperm.xlu0 %1826, %v593_v11  }
  0x9a   : > { %v449_v12 = vpop.permute.xlu1 %448  ;;  %v430_v13 = vpop.permute.xlu0 %429 }
  0x9b   : > { %v452_v16 = vrot.slane %v449_v12, 4  ;;  %v433_v17 = vrot.slane %v430_v13, 4 }
  0x9e   : > { %v451_v14 = vpop.permute.xlu1 %450  ;;  %v432_v15 = vpop.permute.xlu0 %431 }
  0x9f   : > { %v453_v18 = vrot.slane %v451_v14, 4  ;;  %v434_v19 = vrot.slane %v432_v15, 4 }
  0xa1   : > { %v454_v20 = vsel %vm435_vm5, %v452_v16, %v453_v18  ;;  %v457_v21 = vsel %vm2319_vm6, %v451_v14, %v453_v18  ;;  %v436_v22 = vsel %vm435_vm5, %v433_v17, %v434_v19  ;;  %v439_v23 = vsel %vm437_vm7, %v432_v15, %v434_v19  ;;  %v807_v19 = vld [vmem:[%s385_s26] sm:$0xff] }
  0xa2   : > { %v456_v24 = vsel %vm2319_vm6, %v449_v12, %v454_v20  ;;  %461 = vst [vmem:[#allocation4 + $0x14] sm:$0xf] %v457_v21  ;;  %v438_v25 = vsel %vm437_vm7, %v430_v13, %v436_v22  ;;  %443 = vst [vmem:[#allocation4 + $0x8] sm:$0xf] %v439_v23  ;;  %v469_v26 = vpop.permute.xlu1 %468  ;;  %v467_v27 = vpop.permute.xlu0 %466  ;;  %v808_v20 = vld [vmem:[%s385_s26 + $0x8] sm:$0xff]  ;;  %vm1087_vm6 = vcmask 1014784  }
  0xa3   : > { %v471_v28 = vrot.slane %v469_v26, 4  ;;  %v470_v29 = vrot.slane %v467_v27, 4  ;;  %v1629_v30 = vcombine.high %v438_v25, %v456_v24  ;;  %v1628_v31 = vcombine.low %v438_v25, %v456_v24  ;;  %v806_v21 = vld [vmem:[%s2293_s2] sm:$0xf] }
  0xa4   : > { %v574_v24 = vld [vmem:[%s2294_s3] sm:$0x3]  ;;  %v811_v25 = vpack.c.bf16 %v808_v20, %v807_v19 }
  0xa5   : > { %v475_v32 = vsel %vm2318_vm8, %v469_v26, %v471_v28  ;;  %685 = vmatprep.subr.bf16.mxu0 %v1629_v30  ;;  %v472_v35 = vsel %vm435_vm5, %v470_v29, %v471_v28  ;;  %v821_v26 = vsel %vm435_vm5, %v806_v21, 0  ;;  %v809_v28 = vld [vmem:[%s385_s26 + $0x10] sm:$0xff]  ;;  %v810_v29 = vld [vmem:[%s385_s26 + $0x18] sm:$0xff]  ;;  %s1912_s26 = smov 34  }
  0xa6   : > { %479 = vst [vmem:[#allocation4 + $0x20] sm:$0xf] %v475_v32  ;;  %v487_v33 = vpop.permute.xlu1 %486  ;;  %v485_v34 = vpop.permute.xlu0 %484  ;;  %686 = vmatpush1.bf16.msra.mxu0 %v1628_v31  ;;  %v474_v41 = vsel %vm2318_vm8, %v467_v27, %v472_v35  ;;  %v812_v31 = vpack.c.bf16 %v810_v29, %v809_v28  ;;  %v767_v32 = vlaneseq  ;;  %v400_v35 = vld [vmem:[%s2298_s7] sm:$0x7]  ;;  %vm1056_vm8 = vcmask 863938  }
  0xa7   : > { %v489_v36 = vrot.slane %v487_v33, 4  ;;  %v488_v37 = vrot.slane %v485_v34, 4 }
  0xa9   : > { %v493_v38 = vsel %vm2317_vm9, %v487_v33, %v489_v36  ;;  %v490_v39 = vsel %vm435_vm5, %v488_v37, %v489_v36  ;;  %v1827_v40 = vld [vmem:[#allocation4 + $0x8] ss:$12 sps:$4 sm:$0xff]   ;;  %v768_v33 = vshrl.u32 %v767_v32, 7 }
  0xaa   : > { %497 = vst [vmem:[#allocation4 + $0x2c] sm:$0xf] %v493_v38  ;;  %v492_v42 = vsel %vm2317_vm9, %v485_v34, %v490_v39  ;;  %v509_v43 = vpop.permute.xlu1 %508  ;;  %v507_v44 = vpop.permute.xlu0 %506  ;;  %1724 = vmatpush3.bf16.msra.mxu1 %v1827_v40  ;;  %vm1091_vm9 = vcmask 113670  }
  0xab   : > { %v511_v45 = vrot.slane %v509_v43, 4  ;;  %v510_v46 = vrot.slane %v507_v44, 4  ;;  %v1632_v47 = vcombine.high %v474_v41, %v492_v42  ;;  %v1631_v48 = vcombine.low %v474_v41, %v492_v42  ;;  %1725 = vmatprep.subr.bf16.mxu1 %v1904_v8 }
  0xac   : > { %v769_v34 = vsub.s32 0, %v768_v33  ;;  %v773_v36 = vsub.s32 1, %v768_v33 }
  0xad   : > { %v515_v49 = vsel %vm2316_vm10, %v509_v43, %v511_v45  ;;  %v512_v50 = vsel %vm435_vm5, %v510_v46, %v511_v45  ;;  %687 = vmatprep.subr.bf16.mxu0 %v1632_v47 }
  0xae   : > { %519 = vst [vmem:[#allocation4 + $0x44] sm:$0xf] %v515_v49  ;;  %v514_v51 = vsel %vm2316_vm10, %v507_v44, %v512_v50  ;;  %v527_v52 = vpop.permute.xlu1 %526  ;;  %v525_v53 = vpop.permute.xlu0 %524  ;;  %688 = vmatpush1.bf16.msra.mxu0 %v1631_v48  ;;  %v2129_v38 = vrot.slane %v400_v35, %v769_v34  ;;  %v2131_v40 = vrot.slane %v400_v35, %v773_v36  ;;  %v777_v48 = vsub.s32 2, %v768_v33 }
  0xaf   : > { %v529_v54 = vrot.slane %v527_v52, 4  ;;  %v528_v55 = vrot.slane %v525_v53, 4  ;;  %v1635_v56 = vcombine.high %v2044_v4, %v514_v51  ;;  %v1634_v57 = vcombine.low %v2044_v4, %v514_v51 }
  0xb0   : > { %v2136_v51 = vrot.slane %v400_v35, %v777_v48  ;;  %vm1025_vm10 = vcmask 568738  }
  0xb1   : > { %v533_v58 = vsel %vm2315_vm11, %v527_v52, %v529_v54  ;;  %v1828_v59 = vld [vmem:[#allocation4 + $0x20] ss:$12 sps:$4 sm:$0xff]   ;;  %689 = vmatprep.subr.bf16.mxu0 %v1635_v56  ;;  %v530_v62 = vsel %vm435_vm5, %v528_v55, %v529_v54 }
  0xb2   : > { %537 = vst [vmem:[#allocation4 + $0x50] sm:$0xf] %v533_v58  ;;  %v545_v60 = vpop.permute.xlu1 %544  ;;  %v543_v61 = vpop.permute.xlu0 %542  ;;  %690 = vmatpush1.bf16.msra.mxu0 %v1634_v57  ;;  %1726 = vmatpush3.bf16.msra.mxu1 %v1828_v59  ;;  %v532_v5 = vsel %vm2315_vm11, %v525_v53, %v530_v62  ;;  %vm994_vm11 = vcmask 273538  }
  0xb3   : > { %v547_v63 = vrot.slane %v545_v60, 4  ;;  %v546_v1 = vrot.slane %v543_v61, 4  ;;  %1727 = vmatprep.subr.bf16.mxu1 %v1904_v8 }
  0xb5   : > { %v551_v2 = vsel %vm2314_vm12, %v545_v60, %v547_v63  ;;  %v548_v3 = vsel %vm435_vm5, %v546_v1, %v547_v63  ;;  %v1829_v4 = vld [vmem:[#allocation4 + $0x38] ss:$12 sps:$4 sm:$0xff]  }
  0xb6   : > { %555 = vst [vmem:[#allocation4 + $0x5c] sm:$0xf] %v551_v2  ;;  %v550_v6 = vsel %vm2314_vm12, %v543_v61, %v548_v3  ;;  %v563_v7 = vpop.permute.xlu1 %562  ;;  %v561_v9 = vpop.permute.xlu0 %560  ;;  %1728 = vmatpush3.bf16.msra.mxu1 %v1829_v4 }
  0xb7   : > { %v565_v10 = vrot.slane %v563_v7, 4  ;;  %v564_v11 = vrot.slane %v561_v9, 4  ;;  %v1638_v12 = vcombine.high %v532_v5, %v550_v6  ;;  %v1637_v13 = vcombine.low %v532_v5, %v550_v6  ;;  %1729 = vmatprep.subr.bf16.mxu1 %v1904_v8 }
  0xb9   : > { %v569_v14 = vsel %vm2313_vm13, %v563_v7, %v565_v10  ;;  %v566_v15 = vsel %vm435_vm5, %v564_v11, %v565_v10  ;;  %691 = vmatprep.subr.bf16.mxu0 %v1638_v12 }
  0xba   : > { %573 = vst [vmem:[#allocation4 + $0x68] sm:$0xf] %v569_v14  ;;  %v568_v16 = vsel %vm2313_vm13, %v561_v9, %v566_v15  ;;  %692 = vmatpush1.bf16.msra.mxu0 %v1637_v13  ;;  %vm958_vm13 = vcmask 1027938  }
  0xbb   : > { %v1641_v17 = vcombine.high %v568_v16, %v568_v16  ;;  %v1640_v18 = vcombine.low %v568_v16, %v568_v16 }
  0xbd   : > { %v1830_v22 = vld [vmem:[#allocation4 + $0x50] ss:$12 sps:$4 sm:$0xff]   ;;  %1643 = vmatprep.subr.msk.bf16.mxu0 %vm435_vm5, %v1641_v17  ;;  %v677_v23 = vsel %vm435_vm5, %v1640_v18, 0 }
  0xbe   : > { %694 = vmatpush1.bf16.msra.mxu0 %v677_v23  ;;  %1730 = vmatpush3.bf16.msra.mxu1 %v1830_v22 }
  0xbf   : > { %1757 = vmatprep.subr.msk.bf16.mxu0 %vm435_vm5, %v806_v21  ;;  %1731 = vmatprep.subr.bf16.mxu1 %v1904_v8 }
  0xc1   : > { %v1831_v27 = vld [vmem:[#allocation4 + $0x68] ss:$0 sps:$4 sm:$0xff]   ;;  %1644 = vmatmul.mubr.msk.bf16.vlgmr.msra.gmra.mrb[0].mxu0 %vm2312_vm14, %v574_v24 }
  0xc2   : > { %1738 = vmatpush3.bf16.msra.mxu0 %v821_v26  ;;  %1739 = vmatprep.mubr.msk.bf16.mxu0 %vm813_vm15, %v811_v25  ;;  %v683_v30 = vsel %vm435_vm5, %v1831_v27, 0 }
  0xc3   : > { %1743 = vmatprep.subr.bf16.mxu0 %v1904_v8  ;;  %1732 = vmatpush3.bf16.msra.mxu1 %v683_v30 }
  0xc6   : > { %1734 = vmatmul.mubr.msk.bf16.vlgmr.msra.gmra.mrb[0].mxu1 %vm2312_vm14, %v574_v24  ;;  %vm942_vm14 = vcmask 880338  }
  0xc7   : > { %1400 = vmatprep.mubr.bf16.mxu1 %v1901_v0  ;;  %v597_v37 = vpop.permute.xlu0 %596 }
  0xc9   : > { %1740 = vmatmul.mubr.msk.bf16.vlgmr.msra.gmra.mrb[4].mxu0 %vm813_vm15, %v812_v31  ;;  %vm896_vm15 = vcmask 437538  }
  0xca   : > { %1753 = vmatprep.mubr.msk.bf16.mxu0 %vm1911_vm4, %v1904_v8  ;;  %vm789_vm4 = vmor %vm403_vm1, %vm788_vm3  ;;  %vm880_vm1 = vcmask 289938   ;;  %vm977_vm3 = vcmask 1044466  }
  0xcb   : > { %790 = vst.msk [vmem:[#allocation3 + $0xc] sm:$0xff] %vm789_vm4, %v1901_v0  ;;  %vm978_vm4 = vcmask 130054  }
  0xcc   : > { %vm979_vm12 = vmor %vm978_vm4, %vm977_vm3  ;;  %vm1071_vm3 = vcmask 1011538   ;;  %vm2337_vm4 = vcmask 1039360  }
 0x194   : > { %v719_v39 = vpop.f32.mrb[0].mxu0 }
 0x195   : > { %v721_v41 = vpop.f32.mrb[1].mxu0  ;;  %v720_v42 = vadd.f32 %v719_v39, %v597_v37 }
 0x196   : > { %v722_v43 = vadd.f32 %v721_v41, %v597_v37  ;;  %v723_v44 = vpop.f32.mrb[2].mxu0 }
 0x197   : > { %v782_v45 = vmul.f32 %v2129_v38, %v720_v42  ;;  %v724_v46 = vpop.f32.mrb[3].mxu0 }
 0x198   : > { %v783_v47 = vmul.f32 %v2131_v40, %v722_v43 }
 0x199   : > { %v760_v50 = vpop.f32.mrb[0].mxu1 }
 0x19a   : > { %v1690_v49 = vpack.c.bf16 %v783_v47, %v782_v45  ;;  %v761_v52 = vadd.f32 %v760_v50, %v597_v37  ;;  %v1735_v53 = vpop.f32.mrb[1].mxu1 }
 0x19b   : > { %v763_v55 = vpop.f32.mrb[2].mxu1 }
 0x19c   : > { %804 = vst [vmem:[#allocation3 + $0x4] sm:$0x33] %v1690_v49  ;;  %v2139_v54 = vpop.f32.mrb[4].mxu0  ;;  %v784_v59 = vmul.f32 %v2136_v51, %v761_v52  ;;  %v1736_v60 = vpop.f32.mrb[3].mxu1 }
 0x19d   : > { %v2141_v56 = vpop.f32.mrb[5].mxu0  ;;  %v997_v57 = vmul.f32 0.73333335, %v2139_v54  ;;  %v982_v58 = vmul.f32 0.26666668, %v2139_v54 }
 0x19e   : > { %v2146_v61 = vpop.f32.mrb[6].mxu0  ;;  %v1692_v0 = vpack.c.bf16 %v2141_v56, %v2141_v56  ;;  %v1012_v62 = vmul.f32 0.2, %v2139_v54  ;;  %v1011_v3 = vmul.f32 0.8, %v2139_v54  ;;  %v1691_v12 = vpack.c.bf16 %v784_v59, %v784_v59 }
 0x19f   : > { %v860_v63 = vpop.f32.mrb[7].mxu0  ;;  %v999_v1 = vrot.slane %v997_v57, 4  ;;  %v984_v2 = vrot.slane %v982_v58, 4  ;;  %v882_v10 = vmul.f32 0.53333336, %v2141_v56 }
 0x1a0   : > { %v876_v4 = vrot.slane %v1692_v0, 6  ;;  %v996_v5 = vmul.f32 0.26666668, %v860_v63  ;;  %v981_v6 = vmul.f32 0.73333335, %v860_v63  ;;  %v1014_v7 = vrot.slane %v1012_v62, 4 }
 0x1a1   : > { %v961_v9 = vmul.f32 0.8, %v860_v63  ;;  %v883_v11 = vmul.f32 0.46666667, %v2141_v56  ;;  %v960_v16 = vmul.f32 0.2, %v860_v63 }
 0x1a2   : > { %877 = vrot.lane.b32.xlu0 %v876_v4, %s1902_s30  ;;  %v1001_v13 = vadd.f32 %v999_v1, %v996_v5  ;;  %v986_v14 = vadd.f32 %v984_v2, %v981_v6  ;;  %v1016_v15 = vadd.f32 %v1014_v7, %v1011_v3  ;;  %v944_v19 = vmul.f32 0.6666667, %v860_v63  ;;  %805 = vst [vmem:[#allocation3 + $0xc] sm:$0x3] %v1691_v12 }
 0x1a3   : > { %v963_v17 = vrot.slane %v961_v9, 4  ;;  %v885_v18 = vrot.slane %v883_v11, 4  ;;  %v945_v20 = vmul.f32 0.33333334, %v860_v63  ;;  %v899_v24 = vmul.f32 0.93333334, %v2141_v56 }
 0x1a4   : > { %v1700_v21 = vpack.c.bf16 %v1001_v13, %v1001_v13  ;;  %v1699_v22 = vpack.c.bf16 %v986_v14, %v986_v14  ;;  %v1701_v23 = vpack.c.bf16 %v1016_v15, %v1016_v15  ;;  %v898_v28 = vmul.f32 0.06666667, %v2141_v56 }
 0x1a5   : > { %v965_v25 = vadd.f32 %v963_v17, %v960_v16  ;;  %v887_v26 = vadd.f32 %v885_v18, %v882_v10  ;;  %v947_v27 = vrot.slane %v945_v20, 4  ;;  %v901_v29 = vrot.slane %v899_v24, 4 }
 0x1a6   : > { %1006 = vrot.lane.b32.xlu0 %v1700_v21, %s1912_s26  ;;  %991 = vrot.lane.b32.xlu1 %v1699_v22, %s1913_s29  ;;  %v1027_v30 = vmul.f32 0.33333334, %v2139_v54  ;;  %v1028_v31 = vmul.f32 0.6666667, %v2139_v54  ;;  %v1021_v32 = vrot.slane %v1701_v23, 6  ;;  %s1918_s26 = smov 54   ;;  %v1707_v20 = vpack.c.bf16 %v2146_v61, %v2146_v61 }
 0x1a7   : > { %v1698_v33 = vpack.c.bf16 %v965_v25, %v965_v25  ;;  %v949_v34 = vadd.f32 %v947_v27, %v944_v19  ;;  %v1044_v35 = vmul.f32 0.13333334, %v2146_v61  ;;  %v1693_v36 = vpack.c.bf16 %v887_v26, %v887_v26  ;;  %s1919_s29 = smov 70  }
 0x1a8   : > { %v903_v37 = vadd.f32 %v901_v29, %v898_v28  ;;  %v1030_v39 = vrot.slane %v1028_v31, 4  ;;  %v915_v41 = vmul.f32 0.4, %v860_v63  ;;  %v1043_v44 = vmul.f32 0.8666667, %v2139_v54 }
 0x1a9   : > { %v970_v42 = vrot.slane %v1698_v33, 6  ;;  %v1697_v43 = vpack.c.bf16 %v949_v34, %v949_v34  ;;  %v1046_v45 = vrot.slane %v1044_v35, 4  ;;  %v914_v47 = vmul.f32 0.6, %v2141_v56 }
 0x1aa   : > { %1022 = vrot.lane.b32.xlu1 %v1021_v32, %s1914_s27  ;;  %v1032_v46 = vadd.f32 %v1030_v39, %v1027_v30  ;;  %v917_v48 = vrot.slane %v915_v41, 4  ;;  %v1095_v50 = vmul.f32 0.53333336, %v2146_v61  ;;  %v892_v52 = vrot.slane %v1693_v36, 6  ;;  %s1920_s27 = smov 72  }
 0x1ab   : > { %971 = vrot.lane.b32.xlu0 %v970_v42, %s1915_s28  ;;  %v1048_v49 = vadd.f32 %v1046_v45, %v1043_v44  ;;  %v1694_v53 = vpack.c.bf16 %v903_v37, %v903_v37  ;;  %v930_v57 = vmul.f32 0.8666667, %v860_v63  ;;  %v954_v58 = vrot.slane %v1697_v43, 6  ;;  %s1921_s28 = smov 88  }
 0x1ac   : > { %v919_v55 = vadd.f32 %v917_v48, %v914_v47  ;;  %v1702_v59 = vpack.c.bf16 %v1032_v46, %v1032_v46  ;;  %v1097_v60 = vrot.slane %v1095_v50, 4  ;;  %v1074_v0 = vmul.f32 0.06666667, %v2146_v61  ;;  %v1278_v47 = vld [vmem:[%s2297_s6] sm:$0xff] }
 0x1ad   : > { %v929_v62 = vmul.f32 0.13333334, %v2141_v56  ;;  %v932_v1 = vrot.slane %v930_v57, 4  ;;  %v1094_v2 = vmul.f32 0.46666667, %v2146_v61  ;;  %v908_v4 = vrot.slane %v1694_v53, 6 }
 0x1ae   : > { %893 = vrot.lane.b32.xlu1 %v892_v52, %s1916_s20  ;;  %v1059_v3 = vmul.f32 0.6, %v2146_v61  ;;  %v1076_v6 = vrot.slane %v1074_v0, 4  ;;  %v1037_v63 = vrot.slane %v1702_v59, 6  ;;  %v1058_v9 = vmul.f32 0.4, %v2139_v54 }
 0x1af   : > { %955 = vrot.lane.b32.xlu0 %v954_v58, %s1917_s21  ;;  %v934_v5 = vadd.f32 %v932_v1, %v929_v62  ;;  %v1099_v7 = vadd.f32 %v1097_v60, %v1094_v2  ;;  %v1073_v11 = vmul.f32 0.93333334, %v2146_v61  ;;  %v1695_v12 = vpack.c.bf16 %v919_v55, %v919_v55  ;;  %s1922_s20 = smov 90   ;;  %s1923_s21 = smov 14  }
 0x1b0   : > { %v1061_v10 = vrot.slane %v1059_v3, 4  ;;  %v1703_v14 = vpack.c.bf16 %v1048_v49, %v1048_v49 }
 0x1b1   : > { %v1078_v13 = vadd.f32 %v1076_v6, %v1073_v11  ;;  %v1706_v15 = vpack.c.bf16 %v1099_v7, %v1099_v7  ;;  %v1696_v16 = vpack.c.bf16 %v934_v5, %v934_v5 }
 0x1b2   : > { %909 = vrot.lane.b32.xlu1 %v908_v4, %s1918_s26  ;;  %v1063_v56 = vadd.f32 %v1061_v10, %v1058_v9  ;;  %s1924_s26 = smov 124  }
 0x1b3   : > { %1038 = vrot.lane.b32.xlu0 %v1037_v63, %s1919_s29  ;;  %v1705_v17 = vpack.c.bf16 %v1078_v13, %v1078_v13  ;;  %v1104_v18 = vrot.slane %v1706_v15, 6  ;;  %s1925_s29 = smov 106  }
 0x1b4   : > { %v1704_v19 = vpack.c.bf16 %v1063_v56, %v1063_v56 }
 0x1b5   : > { %v1083_v54 = vrot.slane %v1705_v17, 6 }
 0x1b6   : > { %924 = vrot.lane.b32.xlu1 %v1695_v12, %s1920_s27  ;;  %s2327_s27 = smov 127  }
 0x1b7   : > { %1053 = vrot.lane.b32.xlu0 %v1703_v14, %s1921_s28  ;;  %s2328_s28 = smov 111  }
 0x1ba   : > { %939 = vrot.lane.b32.xlu1 %v1696_v16, %s1922_s20  ;;  %s2329_s20 = smov 110  }
 0x1bb   : > { %1105 = vrot.lane.b32.xlu0 %v1104_v18, %s1923_s21 }
 0x1be   : > { %1084 = vrot.lane.b32.xlu1 %v1083_v54, %s1924_s26 }
 0x1c2   : > { %1068 = vrot.lane.b32.xlu1 %v1704_v19, %s1925_s29  ;;  %s366_s29 = sand.u32 1, %s1891_s14  }
 0x1c6   : > { %1114 = vrot.lane.b32.xlu1 %v1707_v20, %s1926_s18  ;;  %s2326_s18 = smov 1  }
 0x214   : > { %v878_v21 = vpop.permute.xlu0 %877 }
 0x215   : > { %881 = vst.msk [vmem:[#allocation3 + $0x4] sm:$0xc] %vm880_vm1, %v878_v21  ;;  %vm974_vm1 = vcmask 1031168  }
 0x218   : > { %v1007_v22 = vpop.permute.xlu0 %1006  ;;  %v992_v23 = vpop.permute.xlu1 %991 }
 0x21c   : > { %v1023_v24 = vpop.permute.xlu1 %1022 }
 0x21d   : > { %v972_v25 = vpop.permute.xlu0 %971 }
 0x21e   : > { %v973_v61 = vrot.slane %v972_v25, 4 }
 0x220   : > { %v894_v26 = vpop.permute.xlu1 %893  ;;  %v975_v32 = vsel %vm974_vm1, %v973_v61, %v972_v25  ;;  %vm2338_vm1 = vmmov %vm2337_vm4 }
 0x221   : > { %897 = vst.msk [vmem:[#allocation3 + $0x4] sm:$0xc] %vm896_vm15, %v894_v26  ;;  %v956_v27 = vpop.permute.xlu0 %955  ;;  %vm1009_vm15 = vcmask 421138  }
 0x224   : > { %v910_v28 = vpop.permute.xlu1 %909 }
 0x225   : > { %913 = vst.msk [vmem:[#allocation3 + $0x4] sm:$0xc] %vm912_vm0, %v910_v28  ;;  %v1039_v30 = vpop.permute.xlu0 %1038  ;;  %vm1041_vm0 = vcmask 716338  }
 0x228   : > { %v925_v29 = vpop.permute.xlu1 %924 }
 0x229   : > { %928 = vst.msk [vmem:[#allocation3 + $0x4] sm:$0xc] %vm927_vm2, %v925_v29  ;;  %v1054_v33 = vpop.permute.xlu0 %1053  ;;  %vm1090_vm2 = vcmask 1044450  }
 0x22c   : > { %v940_v31 = vpop.permute.xlu1 %939 }
 0x22d   : > { %943 = vst.msk [vmem:[#allocation3 + $0x4] sm:$0xc] %vm942_vm14, %v940_v31  ;;  %vm1092_vm14 = vmor %vm1091_vm9, %vm1090_vm2  ;;  %v1106_v39 = vpop.permute.xlu0 %1105  ;;  %vm2341_vm2 = vcmask 900096  }
 0x22e   : > { %959 = vst.msk [vmem:[#allocation3 + $0x4] sm:$0xc] %vm958_vm13, %v956_v27  ;;  %vm1108_vm13 = vcmask 257138  }
 0x22f   : > { %980 = vst.msk [vmem:[#allocation3 + $0x4] sm:$0xcc] %vm979_vm12, %v975_v32 }
 0x230   : > { %v1085_v34 = vpop.permute.xlu1 %1084  ;;  %995 = vst.msk [vmem:[#allocation3 + $0x8] sm:$0xc] %vm994_vm11, %v992_v23  ;;  %vm1117_vm11 = vcmask 404738  }
 0x231   : > { %v1086_v35 = vrot.slane %v1085_v34, 4  ;;  %1010 = vst.msk [vmem:[#allocation3 + $0x8] sm:$0xc] %vm1009_vm15, %v1007_v22  ;;  %vm2339_vm15 = vcmask 908288  }
 0x232   : > { %1026 = vst.msk [vmem:[#allocation3 + $0x8] sm:$0xc] %vm1025_vm10, %v1023_v24  ;;  %vm2335_vm10 = vcmask 7168  }
 0x233   : > { %1042 = vst.msk [vmem:[#allocation3 + $0x8] sm:$0xc] %vm1041_vm0, %v1039_v30  ;;  %v1088_v37 = vsel %vm1087_vm6, %v1086_v35, %v1085_v34  ;;  %vm2331_vm6 = vcmask 146432   ;;  %vm2336_vm12 = vmmov %vm2335_vm10 }
 0x234   : > { %1057 = vst.msk [vmem:[#allocation3 + $0x8] sm:$0xc] %vm1056_vm8, %v1054_v33  ;;  %v1069_v36 = vpop.permute.xlu1 %1068  ;;  %vm2332_vm8 = vmmov %vm2331_vm6 }
 0x235   : > { %1072 = vst.msk [vmem:[#allocation3 + $0x8] sm:$0xc] %vm1071_vm3, %v1069_v36  ;;  %vm2340_vm0 = vmmov %vm2339_vm15 }
 0x236   : > { %1093 = vst.msk [vmem:[#allocation3 + $0x8] sm:$0xcc] %vm1092_vm14, %v1088_v37  ;;  %v1119_v41 = vld [vmem:[#allocation3] sm:$0xff]  ;;  %vm2342_vm3 = vmmov %vm2341_vm2  ;;  %vm2343_vm14 = vcmask 891904  }
 0x237   : > { %1123 = vrot.lane.b32.xlu0 %v1119_v41, %s1903_s11  ;;  %1109 = vst.msk [vmem:[#allocation3 + $0xc] sm:$0xc] %vm1108_vm13, %v1106_v39  ;;  %vm2344_vm13 = vmmov %vm2343_vm14 }
 0x238   : > { %v1115_v42 = vpop.permute.xlu1 %1114 }
 0x239   : > { %1118 = vst.msk [vmem:[#allocation3 + $0xc] sm:$0xc] %vm1117_vm11, %v1115_v42  ;;  %vm2345_vm11 = vcmask 588800  }
 0x23b   : > { %1140 = vrot.lane.b32.xlu0 %v1119_v41, %s1902_s30 }
 0x23d   : > { %v2173_v43 = vld [vmem:[#allocation3 + $0x4] sm:$0xff] }
 0x23f   : > { %1157 = vrot.lane.b32.xlu0 %v1119_v41, %s1905_s12 }
 0x240   : > { %v1188_v44 = vld [vmem:[#allocation3 + $0xc] sm:$0xf] }
 0x241   : > { %v1120_v45 = vld [vmem:[#allocation3 + $0x8] sm:$0xff]  ;;  %1190 = vst [vmem:[#allocation4 + $0x38] sm:$0xf] %v1188_v44 }
 0x242   : > { %1125 = vrot.lane.b32.xlu1 %v1120_v45, %s1903_s11  ;;  %v1192_v46 = vld [vmem:[#allocation3 + $0xc] sm:$0xff]  ;;  %s2330_s11 = smov 109  }
 0x243   : > { %1174 = vrot.lane.b32.xlu0 %v1119_v41, %s2326_s18 }
 0x246   : > { %1142 = vrot.lane.b32.xlu1 %v1120_v45, %s1902_s30 }
 0x247   : > { %1195 = vrot.lane.b32.xlu0 %v2173_v43, %s2327_s27 }
 0x24a   : > { %1159 = vrot.lane.b32.xlu1 %v1120_v45, %s1905_s12  ;;  %s1470_s12 = scalar_lea.sflag [#allocation6], %s366_s29 }
 0x24b   : > { %1212 = vrot.lane.b32.xlu0 %v2173_v43, %s2328_s28 }
 0x24e   : > { %1176 = vrot.lane.b32.xlu1 %v1120_v45, %s2326_s18  ;;  %s1758_s18 = smul.u32 24, %s366_s29 }
 0x24f   : > { %1229 = vrot.lane.b32.xlu0 %v2173_v43, %s2329_s20 }
 0x252   : > { %1197 = vrot.lane.b32.xlu1 %v1192_v46, %s2327_s27  ;;  %s368_s27 = scalar_lea.vmem [#allocation5], %s1758_s18  ;;  %s1927_s18 = smov [#allocation5]  }
 0x253   : > { %1246 = vrot.lane.b32.xlu0 %v2173_v43, %s2330_s11  ;;  %s1841_s0 = sshll.u32 %s1927_s18, 4  ;;  %s1842_s0 = int_to_ptr.vmem [resolvable:$false] %s1841_s0 }
 0x254   : > { %s1843_s1 = scalar_lea.vmem %s1842_s0, 768 }
 0x256   : > { %1214 = vrot.lane.b32.xlu1 %v1192_v46, %s2328_s28  ;;  %s1760_s28 = smul.u32 384, %s2004_s17 }
 0x257   : > { %1281 = vperm.xlu0 %1826, %v1278_v47  }
 0x258   : > { %s2244_s21 = scalar_lea.hbm %s2299_s8, %s1760_s28 }
 0x25a   : > { %1231 = vrot.lane.b32.xlu1 %v1192_v46, %s2329_s20  ;;  %s1492_s20 = sshll.u32 %s368_s27, 4  ;;  %s1493_s20 = int_to_ptr.vmem [resolvable:$true] %s1492_s20 }
 0x25b   : > { %s1837_s26 = scalar_lea.vmem %s1493_s20, 384  ;;  %p1844_p0 = scmp.lt.s32.totalorder %s1493_s20, %s1842_s0 }
 0x25c   : > { %p1838_p11 = scmp.ne.s32.totalorder %s1493_s20, %s1837_s26  ;;  %p1845_p1 = scmp.lt.s32.totalorder %s1843_s1, %s1837_s26 }
 0x25e   : > { %1248 = vrot.lane.b32.xlu1 %v1192_v46, %s2330_s11  ;;  %p1839_p12 = pnand %p1838_p11, %p2021_p5  ;;  %p1846_p2 = por %p1845_p1, %p1844_p0 }
 0x260   : > { %p1840_p13 = pneg %p1839_p12 }
 0x262   : > { %p1847_p3 = pnand %p1846_p2, %p1840_p13 }
 0x2a9   : > { %v1124_v48 = vpop.permute.xlu0 %1123 }
 0x2aa   : > { %v1127_v53 = vrot.slane %v1124_v48, 4 }
 0x2ad   : > { %v1141_v49 = vpop.permute.xlu0 %1140 }
 0x2ae   : > { %v1144_v62 = vrot.slane %v1141_v49, 4 }
 0x2b1   : > { %v1158_v50 = vpop.permute.xlu0 %1157 }
 0x2b2   : > { %v1161_v63 = vrot.slane %v1158_v50, 4 }
 0x2b4   : > { %v1126_v52 = vpop.permute.xlu1 %1125 }
 0x2b5   : > { %v1128_v55 = vrot.slane %v1126_v52, 4  ;;  %v1175_v57 = vpop.permute.xlu0 %1174 }
 0x2b6   : > { %v1178_v14 = vrot.slane %v1175_v57, 4 }
 0x2b7   : > { %v1129_v58 = vsel %vm435_vm5, %v1127_v53, %v1128_v55  ;;  %v1131_v59 = vsel %vm437_vm7, %v1126_v52, %v1128_v55 }
 0x2b8   : > { %v1130_v60 = vsel %vm437_vm7, %v1124_v48, %v1129_v58  ;;  %1135 = vst [vmem:[#allocation4 + $0x8] sm:$0xf] %v1131_v59  ;;  %v1143_v0 = vpop.permute.xlu1 %1142  ;;  %vm2333_vm7 = vcmask 138240  }
 0x2b9   : > { %v1145_v1 = vrot.slane %v1143_v0, 4  ;;  %v1196_v5 = vpop.permute.xlu0 %1195  ;;  %vm2334_vm9 = vmmov %vm2333_vm7 }
 0x2ba   : > { %v1199_v21 = vrot.slane %v1196_v5, 4 }
 0x2bb   : > { %v1146_v2 = vsel %vm435_vm5, %v1144_v62, %v1145_v1  ;;  %v1148_v3 = vsel %vm2331_vm6, %v1143_v0, %v1145_v1  ;;  %v1259_v62 = vld [vmem:[%s2296_s5] sm:$0xf]  ;;  %vm2346_vm6 = vmmov %vm2345_vm11 }
 0x2bc   : > { %v1147_v4 = vsel %vm2332_vm8, %v1141_v49, %v1146_v2  ;;  %1152 = vst [vmem:[#allocation4 + $0x14] sm:$0xf] %v1148_v3  ;;  %v1160_v6 = vpop.permute.xlu1 %1159 }
 0x2bd   : > { %v1162_v7 = vrot.slane %v1160_v6, 4  ;;  %v1666_v9 = vcombine.low %v1130_v60, %v1147_v4  ;;  %v1667_v10 = vcombine.high %v1130_v60, %v1147_v4  ;;  %v1213_v16 = vpop.permute.xlu0 %1212 }
 0x2be   : > { %v1216_v61 = vrot.slane %v1213_v16, 4 }
 0x2bf   : > { %v1163_v11 = vsel %vm435_vm5, %v1161_v63, %v1162_v7  ;;  %v1165_v56 = vsel %vm2333_vm7, %v1160_v6, %v1162_v7  ;;  %1368 = vmatprep.subr.bf16.mxu1 %v1667_v10 }
 0x2c0   : > { %v1164_v12 = vsel %vm2334_vm9, %v1158_v50, %v1163_v11  ;;  %1169 = vst [vmem:[#allocation4 + $0x20] sm:$0xf] %v1165_v56  ;;  %v1177_v13 = vpop.permute.xlu1 %1176  ;;  %1369 = vmatpush1.bf16.msra.mxu1 %v1666_v9 }
 0x2c1   : > { %v1179_v15 = vrot.slane %v1177_v13, 4  ;;  %v1230_v27 = vpop.permute.xlu0 %1229 }
 0x2c2   : > { %v1233_v39 = vrot.slane %v1230_v27, 4 }
 0x2c3   : > { %v1180_v17 = vsel %vm435_vm5, %v1178_v14, %v1179_v15  ;;  %v1182_v18 = vsel %vm2335_vm10, %v1177_v13, %v1179_v15  ;;  %v1832_v54 = vld [vmem:[#allocation4 + $0x8] ss:$12 sps:$4 sm:$0xff]  }
 0x2c4   : > { %v1181_v19 = vsel %vm2336_vm12, %v1175_v57, %v1180_v17  ;;  %1186 = vst [vmem:[#allocation4 + $0x2c] sm:$0xf] %v1182_v18  ;;  %v1198_v20 = vpop.permute.xlu1 %1197  ;;  %1744 = vmatpush3.bf16.msra.mxu0 %v1832_v54 }
 0x2c5   : > { %v1200_v22 = vrot.slane %v1198_v20, 4  ;;  %v1669_v23 = vcombine.low %v1164_v12, %v1181_v19  ;;  %v1670_v24 = vcombine.high %v1164_v12, %v1181_v19  ;;  %1745 = vmatprep.subr.bf16.mxu0 %v1904_v8  ;;  %v1247_v42 = vpop.permute.xlu0 %1246 }
 0x2c6   : > { %v1250_v48 = vrot.slane %v1247_v42, 4 }
 0x2c7   : > { %v1201_v25 = vsel %vm435_vm5, %v1199_v21, %v1200_v22  ;;  %v1203_v26 = vsel %vm2337_vm4, %v1198_v20, %v1200_v22  ;;  %1370 = vmatprep.subr.bf16.mxu1 %v1670_v24 }
 0x2c8   : > { %v1202_v28 = vsel %vm2338_vm1, %v1196_v5, %v1201_v25  ;;  %1207 = vst [vmem:[#allocation4 + $0x44] sm:$0xf] %v1203_v26  ;;  %v1215_v29 = vpop.permute.xlu1 %1214  ;;  %1371 = vmatpush1.bf16.msra.mxu1 %v1669_v23 }
 0x2c9   : > { %v1217_v30 = vrot.slane %v1215_v29, 4  ;;  %v1672_v31 = vcombine.low %v2173_v43, %v1202_v28  ;;  %v1673_v32 = vcombine.high %v2173_v43, %v1202_v28 }
 0x2cb   : > { %v1218_v33 = vsel %vm435_vm5, %v1216_v61, %v1217_v30  ;;  %v1220_v34 = vsel %vm2339_vm15, %v1215_v29, %v1217_v30  ;;  %v1833_v35 = vld [vmem:[#allocation4 + $0x20] ss:$12 sps:$4 sm:$0xff]   ;;  %1372 = vmatprep.subr.bf16.mxu1 %v1673_v32 }
 0x2cc   : > { %v1219_v36 = vsel %vm2340_vm0, %v1213_v16, %v1218_v33  ;;  %1224 = vst [vmem:[#allocation4 + $0x50] sm:$0xf] %v1220_v34  ;;  %v1232_v37 = vpop.permute.xlu1 %1231  ;;  %1373 = vmatpush1.bf16.msra.mxu1 %v1672_v31  ;;  %1746 = vmatpush3.bf16.msra.mxu0 %v1833_v35 }
 0x2cd   : > { %v1234_v41 = vrot.slane %v1232_v37, 4  ;;  %1747 = vmatprep.subr.bf16.mxu0 %v1904_v8 }
 0x2cf   : > { %v1235_v44 = vsel %vm435_vm5, %v1233_v39, %v1234_v41  ;;  %v1237_v43 = vsel %vm2341_vm2, %v1232_v37, %v1234_v41  ;;  %v1834_v45 = vld [vmem:[#allocation4 + $0x38] ss:$12 sps:$4 sm:$0xff]  }
 0x2d0   : > { %v1236_v46 = vsel %vm2342_vm3, %v1230_v27, %v1235_v44  ;;  %1241 = vst [vmem:[#allocation4 + $0x5c] sm:$0xf] %v1237_v43  ;;  %v1249_v47 = vpop.permute.xlu1 %1248  ;;  %1748 = vmatpush3.bf16.msra.mxu0 %v1834_v45 }
 0x2d1   : > { %v1251_v49 = vrot.slane %v1249_v47, 4  ;;  %v1675_v50 = vcombine.low %v1219_v36, %v1236_v46  ;;  %v1676_v52 = vcombine.high %v1219_v36, %v1236_v46  ;;  %1749 = vmatprep.subr.bf16.mxu0 %v1904_v8 }
 0x2d3   : > { %v1252_v53 = vsel %vm435_vm5, %v1250_v48, %v1251_v49  ;;  %v1254_v55 = vsel %vm2343_vm14, %v1249_v47, %v1251_v49  ;;  %1374 = vmatprep.subr.bf16.mxu1 %v1676_v52 }
 0x2d4   : > { %v1253_v57 = vsel %vm2344_vm13, %v1247_v42, %v1252_v53  ;;  %1258 = vst [vmem:[#allocation4 + $0x68] sm:$0xf] %v1254_v55  ;;  %1375 = vmatpush1.bf16.msra.mxu1 %v1675_v50 }
 0x2d5   : > { %v1679_v58 = vcombine.high %v1253_v57, %v1253_v57  ;;  %v1678_v59 = vcombine.low %v1253_v57, %v1253_v57 }
 0x2d6   : > { %v1282_v3 = vpop.permute.xlu0 %1281 }
 0x2d7   : > { %v1835_v60 = vld [vmem:[#allocation4 + $0x50] ss:$12 sps:$4 sm:$0xff]   ;;  %1681 = vmatprep.subr.msk.bf16.mxu1 %vm435_vm5, %v1679_v58  ;;  %v1360_v0 = vsel %vm435_vm5, %v1678_v59, 0 }
 0x2d8   : > { %1377 = vmatpush1.bf16.msra.mxu1 %v1360_v0  ;;  %1750 = vmatpush3.bf16.msra.mxu0 %v1835_v60 }
 0x2d9   : > { %1751 = vmatprep.subr.bf16.mxu0 %v1904_v8 }
 0x2db   : > { %v1836_v1 = vld [vmem:[#allocation4 + $0x68] ss:$0 sps:$4 sm:$0xff]   ;;  %1682 = vmatmul.mubr.msk.bf16.vlgmr.msra.gmra.mrb[4].mxu1 %vm2345_vm11, %v1259_v62 }
 0x2dc   : > { %v1366_v2 = vsel %vm435_vm5, %v1836_v1, 0 }
 0x2dd   : > { %1752 = vmatpush3.bf16.msra.mxu0 %v1366_v2 }
 0x2e0   : > { %1754 = vmatmul.mubr.msk.bf16.vlgmr.msra.gmra.mrb[8].mxu0 %vm2346_vm6, %v1259_v62 }
 0x3ae   : > { %v1402_v4 = vpop.f32.mrb[4].mxu1 }
 0x3af   : > { %v1403_v5 = vadd.f32 %v1402_v4, %v1282_v3  ;;  %v1404_v6 = vpop.f32.mrb[5].mxu1 }
 0x3b0   : > { %v1405_v63 = vadd.f32 %v1404_v6, %v1282_v3  ;;  %v1406_v7 = vpop.f32.mrb[6].mxu1 }
 0x3b1   : > { %v1449_v9 = vmul.f32 %v1403_v5, %v2129_v38  ;;  %v1407_v8 = vpop.f32.mrb[7].mxu1 }
 0x3b2   : > { %v1450_v10 = vmul.f32 %v1405_v63, %v2131_v40 }
 0x3b3   : > { %1452 = vst [vmem:[%s368_s27] sm:$0xff] %v1449_v9  ;;  %v1461_v11 = vmul.f32 %v1449_v9, %v1449_v9  ;;  %v1443_v56 = vpop.f32.mrb[8].mxu0 }
 0x3b4   : > { %1453 = vst [vmem:[%s368_s27 + $0x8] sm:$0xff] %v1450_v10  ;;  %v1455_v12 = vadd.f32 %v1450_v10, %v1449_v9  ;;  %v1462_v13 = vmul.f32 %v1450_v10, %v1450_v10  ;;  %v1444_v14 = vadd.f32 %v1443_v56, %v1282_v3  ;;  %v1755_v15 = vpop.f32.mrb[9].mxu0 }
 0x3b5   : > { %v1446_v16 = vpop.f32.mrb[10].mxu0 }
 0x3b6   : > { %v1464_v17 = vadd.f32 %v1462_v13, %v1461_v11  ;;  %v1451_v18 = vmul.f32 %v1444_v14, %v2136_v51  ;;  %v1756_v38 = vpop.f32.mrb[11].mxu0 }
 0x3b8   : > { %1454 = vst [vmem:[%s368_s27 + $0x10] sm:$0xff] %v1451_v18  ;;  %v1456_v54 = vadd.f32 %v1455_v12, %v1451_v18  ;;  %v1463_v40 = vmul.f32 %v1451_v18, %v1451_v18 }
 0x3ba   : > { %1457 = vadd.xlane.f32.xlu1 %v1456_v54  ;;  %v1465_v19 = vadd.f32 %v1464_v17, %v1463_v40 }
 0x3bc   : > { %1466 = vadd.xlane.f32.xlu0 %v1465_v19 }
 0x3bd   : > { %1850 = shalt.err (!%p1847_p3)
}
 0x3be   : > { %s1851_s17 = scalar_lea.hbm %s2244_s21, 384  ;;  %s1855_s28 = scalar_lea.hbm %s2299_s8, 768 }
 0x3bf   : > { %p1852_p4 = scmp.ne.s32.totalorder %s2244_s21, %s1851_s17  ;;  %p1856_p9 = scmp.lt.u32.totalorder %s2244_s21, %s2299_s8 }
 0x3c0   : > { %p1857_p10 = scmp.lt.u32.totalorder %s1855_s28, %s1851_s17  ;;  %p1859_p12 = scmp.lt.u32.totalorder %s1851_s17, %s2244_s21 }
 0x3c1   : > { %p1853_p7 = pnand %p1852_p4, %p2021_p5 }
 0x3c2   : > { %p1858_p11 = por %p1857_p10, %p1856_p9 }
 0x3c3   : > { %p1854_p8 = pneg %p1853_p7 }
 0x3c4   : > { %p1860_p13 = por %p1859_p12, %p1858_p11 }
 0x3c6   : > { %p1861_p0 = pnand %p1860_p13, %p1854_p8 }
 0x3c8   : > { %1864 = shalt.err (!%p1861_p0)
}
 0x3c9   : > { %1761 = dma.vmem_to_hbm [thread:$0]  (%p2021_p5), %s1493_s20, 384, %s2244_s21, %s1470_s12   ;;  %vm2347_vm5 = vmmov %vm2335_vm10 }
 0x3ca   : > { %s1624_s1 = sshll.u32 %s2037_s25, 3  ;;  %vm2348_vm8 = vmmov %vm2347_vm5 }
 0x3cb   : > { %s394_s18 = scalar_lea.vmem %s2300_s9, %s1624_s1  ;;  %s398_s28 = scalar_lea.vmem %s2301_s10, %s1624_s1 }
 0x447   : > { %v1458_v51 = vpop.xlane.xlu1 %1457 }
 0x448   : > { %1460 = vst.msk [vmem:[%s394_s18] sm:$0xff] %vm2347_vm5, %v1458_v51 }
 0x449   : > { %v1467_v20 = vpop.xlane.xlu0 %1466 }
 0x44a   : > { %1468 = vst.msk [vmem:[%s398_s28] sm:$0xff] %vm2348_vm8, %v1467_v20 }
 0x44b PF: > { %p1767_p5 = scmp.ge.s32.totalorder %s1899_s16, 2  ;;  %s1510_s23 = sand.u32 1, %s1887_s13  }
 0x44c   : > { %s1511_s25 = scalar_lea.sflag [#allocation6], %s1510_s23 }
 0x44d   : > { %p1764_p1 = pnand %p1767_p5, %p2025_p6 }
 0x44f   : > { %1882 = dma.done.wait (!%p1764_p1), %s1511_s25, 384  }
 0x450   : > { %1884 = vsyncadd (!%p1764_p1), %s1511_s25, 4294966912  ;;  %p21_p2 = scmp.ge.s32.totalorder %s2008_s19, 4   ;;  %s2349_s13 = smov %s1891_s14 }
 0x451   : > { %s2350_s14 = smov %s1895_s15  ;;  %s2351_s15 = smov %s2019_s22 }
 0x452   : > { %s2352_s16 = smov %s2008_s19  ;;  %23 = sbr.rel (!%p21_p2) target bundleno = 6 (0x6), region = 114 }
 0x459   :  { %1530 = vsyncpa [#allocation6], 1 }
 0x45a   :  { %1532 = vsyncpa [#allocation6 + $0x1], 1 }

</bundles_post_ra>
